<compile_context>
chip_gen: v7x
topology: tpu7x:2x2x1
jax: 0.10.0
libtpu: 0.0.40
codegen_flags: <defaults>
</compile_context>

<pallas_src>
import jax
import jax.numpy as jnp
from jax.experimental import pallas as pl
from jax.experimental.pallas import tpu as pltpu

_VMEM_LIMIT_BYTES = 32 * 1024 * 1024   # explicit scoped-VMEM limit (safe on v5e/v6e/v7x)
_LANE = 128
_FUSED_G_BUDGET_BYTES = 8 * 1024 * 1024  # max bf16 size of the unrolled map G


# ---------------------------------------------------------------------------
# Kernels
# ---------------------------------------------------------------------------
def _affine_kernel(x_ref, g_ref, b_ref, o_ref):
    """Fully fused Conv2dBlock forward for one image.

    x_ref: (1, 1, d_in)       f32  NCHW-flattened input image
    g_ref: (d_in, d_out_pad)  bf16 unrolled conv-stack matrix (grid-resident)
    b_ref: (1, d_out_pad)     f32  composed bias broadcast over output positions
    o_ref: (1, 1, d_out_pad)  f32  NCHW-flattened output image
    """
    x = x_ref[0].astype(jnp.bfloat16)                          # (1, d_in)
    acc = jnp.dot(x, g_ref[...], preferred_element_type=jnp.float32)
    o_ref[0] = acc + b_ref[...]


def _matmul_bias_kernel(p_ref, w_ref, b_ref, o_ref):
    """General path: (row_tile, K_pad) @ (K_pad, C_pad) + bias, bf16 store."""
    acc = jnp.dot(p_ref[...], w_ref[...], preferred_element_type=jnp.float32)
    o_ref[...] = (acc + b_ref[...]).astype(o_ref.dtype)


# ---------------------------------------------------------------------------
# One-time parameter packing (outside the hot path).
# ---------------------------------------------------------------------------
def _compose_conv_layers(params):
    """Fold a stack of VALID, stride-1, groups=1 nn.Conv2d layers with no
    activation in between (the default Conv2dBlock config) into one effective
    conv.  Exact in f32 up to re-association."""
    w_eff, b_eff = params[0]
    w_eff = jnp.asarray(w_eff, jnp.float32)
    b_eff = jnp.asarray(b_eff, jnp.float32)
    for w_next, b_next in params[1:]:
        w_next = jnp.asarray(w_next, jnp.float32)
        b_next = jnp.asarray(b_next, jnp.float32)
        cout, _, kh2, kw2 = w_next.shape
        _, cin, kh1, kw1 = w_eff.shape
        new_w = jnp.zeros((cout, cin, kh1 + kh2 - 1, kw1 + kw2 - 1), jnp.float32)
        for r in range(kh2):
            for s in range(kw2):
                new_w = new_w.at[:, :, r:r + kh1, s:s + kw1].add(
                    jnp.einsum('oc,cipq->oipq', w_next[:, :, r, s], w_eff))
        b_eff = b_next + jnp.einsum('ocrs,c->o', w_next, b_eff)
        w_eff = new_w
    return w_eff, b_eff


def _round_up(v, m):
    return -(-v // m) * m


def prepare_conv2d_block_params(params, input_hw=None):
    """One-time packing.

    Always builds the (K_pad, C_pad) flattened composed weights for the
    general im2col path.  If `input_hw` is given and the fully unrolled affine
    map fits the VMEM budget, also builds G (d_in, d_out_pad) so the forward
    collapses to a single fused matmul kernel with zero layout glue."""
    w_eff, b_eff = _compose_conv_layers(params)
    cout, cin, kh, kw = w_eff.shape

    # ---- general path packing (shape-agnostic) ----
    k = kh * kw * cin
    k_pad = _round_up(k, _LANE)
    c_pad = _round_up(cout, _LANE)
    w_flat = jnp.transpose(w_eff, (2, 3, 1, 0)).reshape(k, cout)   # (kh,kw,cin) x cout
    w_flat = jnp.pad(w_flat, ((0, k_pad - k), (0, c_pad - cout))).astype(jnp.bfloat16)
    b_flat = jnp.pad(b_eff.reshape(1, cout), ((0, 0), (0, c_pad - cout)))
    b_flat = b_flat.astype(jnp.float32)

    prep = dict(w_flat=w_flat, b_flat=b_flat, kh=kh, kw=kw,
                cin=cin, cout=cout, k=k, fused=None)

    # ---- fully fused path packing (for a known, small spatial size) ----
    if input_hw is not None:
        h, w = input_hw
        ho, wo = h - kh + 1, w - kw + 1
        assert ho > 0 and wo > 0, (h, w, kh, kw)
        d_in = cin * h * w
        d_out = cout * ho * wo
        d_out_pad = _round_up(d_out, _LANE)
        if d_in * d_out_pad * 2 <= _FUSED_G_BUDGET_BYTES:
            # Unroll the composed conv into a dense matrix by pushing the
            # NCHW-flattened identity basis through it once (f32, exact).
            basis = jnp.eye(d_in, dtype=jnp.float32).reshape(d_in, cin, h, w)
            resp = jax.lax.conv_general_dilated(
                basis, w_eff, window_strides=(1, 1), padding="VALID",
                dimension_numbers=("NCHW", "OIHW", "NCHW"),
                precision=jax.lax.Precision.HIGHEST)           # (d_in, cout, ho, wo)
            g = resp.reshape(d_in, d_out)                       # cols in NCHW output order
            g = jnp.pad(g, ((0, 0), (0, d_out_pad - d_out))).astype(jnp.bfloat16)
            b_full = jnp.broadcast_to(
                b_eff[:, None, None], (cout, ho, wo)).reshape(1, d_out)
            b_full = jnp.pad(b_full, ((0, 0), (0, d_out_pad - d_out)))
            b_full = b_full.astype(jnp.float32)
            prep['fused'] = dict(g=g, b_full=b_full, h=h, w=w, ho=ho, wo=wo,
                                 d_in=d_in, d_out=d_out)
    return prep


# ---------------------------------------------------------------------------
# Fully fused forward (default / small problem sizes).
# ---------------------------------------------------------------------------
def _forward_fused(x_nchw, prep):
    fz = prep['fused']
    g, b_full = fz['g'], fz['b_full']
    n = x_nchw.shape[0]
    d_in, d_out = fz['d_in'], fz['d_out']
    d_out_pad = g.shape[1]

    # Free bitcast reshape: raw NCHW image rows.
    x_rows = x_nchw.reshape(n, 1, d_in)

    out = pl.pallas_call(
        _affine_kernel,
        out_shape=jax.ShapeDtypeStruct((n, 1, d_out_pad), jnp.float32),
        grid_spec=pltpu.PrefetchScalarGridSpec(
            num_scalar_prefetch=0,
            grid=(n,),   # >= 2 parallel steps whenever N >= 2 (v7x: both TCs)
            in_specs=[
                pl.BlockSpec((1, 1, d_in), lambda i: (i, 0, 0)),
                pl.BlockSpec((d_in, d_out_pad), lambda i: (0, 0)),   # resident
                pl.BlockSpec((1, d_out_pad), lambda i: (0, 0)),      # resident
            ],
            out_specs=pl.BlockSpec((1, 1, d_out_pad), lambda i: (i, 0, 0)),
        ),
        compiler_params=pltpu.CompilerParams(
            dimension_semantics=("parallel",),
            vmem_limit_bytes=_VMEM_LIMIT_BYTES,
        ),
    )(x_rows, g, b_full)

    y = out[:, 0, :d_out] if d_out_pad > d_out else out[:, 0, :]
    # Free bitcast reshape: columns are already in (Cout, Ho, Wo) order.
    return y.reshape(n, prep['cout'], fz['ho'], fz['wo']).astype(x_nchw.dtype)


# ---------------------------------------------------------------------------
# General tiled forward (shapes where the unrolled map would not fit VMEM).
# ---------------------------------------------------------------------------
def _pick_row_tile(m, k_pad, c_pad, vmem_budget=16 * 1024 * 1024):
    """Largest 8-aligned row tile whose double-buffered blocks (patches bf16 +
    output bf16) plus the resident weights/bias fit the VMEM budget; capped so
    the ("parallel",) grid has >= 2 steps whenever M holds two 8-row tiles
    (keeps both v7x TensorCores busy)."""
    weight_bytes = 2 * (k_pad * c_pad * 2) + 2 * (8 * c_pad * 4)

    def fits(t):
        return weight_bytes + 2 * t * (k_pad + c_pad) * 2 <= vmem_budget

    t = 1024
    while t > 8 and not fits(t):
        t //= 2
    if m >= 16:
        t = min(t, max(8, _round_up(m // 2, 8)))
    else:
        t = min(t, max(8, _round_up(m, 8)))
    return t


def _forward_general(x_nchw, prep):
    w_flat, b_flat = prep['w_flat'], prep['b_flat']
    kh, kw, cin, cout, k = prep['kh'], prep['kw'], prep['cin'], prep['cout'], prep['k']
    n, c, h, w = x_nchw.shape
    ho, wo = h - kh + 1, w - kw + 1
    assert ho > 0 and wo > 0, (h, w, kh, kw)
    k_pad, c_pad = w_flat.shape
    m = n * ho * wo

    # Single NCHW -> NHWC transpose + bf16 cast, then XLA im2col glue.
    # NOTE: for genuinely large inputs the next refinement is a halo'd input
    # BlockSpec with in-kernel patch assembly so x is read once from HBM
    # instead of kh*kw times via these materialized patches.
    x = jnp.transpose(x_nchw, (0, 2, 3, 1)).astype(jnp.bfloat16)
    cols = [x[:, a:a + ho, b:b + wo, :] for a in range(kh) for b in range(kw)]
    if k_pad > k:
        cols.append(jnp.zeros((n, ho, wo, k_pad - k), jnp.bfloat16))
    patches = jnp.concatenate(cols, axis=-1).reshape(m, k_pad)

    row_tile = _pick_row_tile(m, k_pad, c_pad)
    m_pad = pl.cdiv(m, row_tile) * row_tile
    if m_pad > m:
        patches = jnp.pad(patches, ((0, m_pad - m), (0, 0)))

    out = pl.pallas_call(
        _matmul_bias_kernel,
        out_shape=jax.ShapeDtypeStruct((m_pad, c_pad), jnp.bfloat16),
        grid_spec=pltpu.PrefetchScalarGridSpec(
            num_scalar_prefetch=0,
            grid=(m_pad // row_tile,),
            in_specs=[
                pl.BlockSpec((row_tile, k_pad), lambda i: (i, 0)),
                pl.BlockSpec((k_pad, c_pad), lambda i: (0, 0)),   # resident
                pl.BlockSpec((1, c_pad), lambda i: (0, 0)),       # resident
            ],
            out_specs=pl.BlockSpec((row_tile, c_pad), lambda i: (i, 0)),
        ),
        compiler_params=pltpu.CompilerParams(
            dimension_semantics=("parallel",),
            vmem_limit_bytes=_VMEM_LIMIT_BYTES,
        ),
    )(patches, w_flat, b_flat)

    y = out[:m, :cout].reshape(n, ho, wo, cout)
    return jnp.transpose(y, (0, 3, 1, 2)).astype(x_nchw.dtype)


# ---------------------------------------------------------------------------
# Forward dispatcher (hot path).
# ---------------------------------------------------------------------------
def conv2d_block_forward(x_nchw, prep):
    """Conv2dBlock.forward for the default config: stacked VALID, stride-1,
    groups=1 Conv2d layers with bias and no activation / pooling / BN."""
    n, c, h, w = x_nchw.shape
    assert c == prep['cin'], (c, prep['cin'])
    fz = prep.get('fused')
    if fz is not None and (h, w) == (fz['h'], fz['w']):
        return _forward_fused(x_nchw, prep)
    return _forward_general(x_nchw, prep)


def init_conv2d_block_params(key, channels, kernel_size):
    """Deterministic init matching nn.Conv2d parameter shapes:
    weight [Cout, Cin, KH, KW], bias [Cout], uniform(-1/sqrt(fan_in), ...)."""
    params = []
    num_layers = len(channels) - 1
    keys = jax.random.split(key, 2 * num_layers)
    for i, (cin, cout) in enumerate(zip(channels[:-1], channels[1:])):
        fan_in = cin * kernel_size * kernel_size
        bound = 1.0 / (fan_in ** 0.5)
        w = jax.random.uniform(
            keys[2 * i], (cout, cin, kernel_size, kernel_size),
            jnp.float32, -bound, bound)
        b = jax.random.uniform(
            keys[2 * i + 1], (cout,), jnp.float32, -bound, bound)
        params.append((w, b))
    return params


if __name__ == "__main__":
    # Conv2dBlock(channels=[4, 8, 8], kernel_size=5) on input (2, 4, 16, 16):
    #   conv1: 16x16 -> 12x12, conv2: 12x12 -> 8x8  => output (2, 8, 8, 8)
    channels = [4, 8, 8]
    kernel_size = 5

    root = jax.random.PRNGKey(0)
    kx, kp = jax.random.split(root)
    x = jax.random.normal(kx, (2, channels[0], 16, 16), jnp.float32)
    params = init_conv2d_block_params(kp, channels, kernel_size)

    # Pure-JAX reference with the exact module semantics (per-layer f32 convs).
    ref = x
    for w, b in params:
        ref = jax.lax.conv_general_dilated(
            ref, w, window_strides=(1, 1), padding="VALID",
            dimension_numbers=("NCHW", "OIHW", "NCHW"),
            precision=jax.lax.Precision.HIGHEST,
        ) + b[None, :, None, None]

    # --- fully fused single-kernel path (the shipped problem size) ---
    prep_fused = prepare_conv2d_block_params(params, input_hw=(16, 16))
    assert prep_fused['fused'] is not None
    fwd_fused = jax.jit(lambda inp: conv2d_block_forward(inp, prep_fused))
    y_fused = jax.block_until_ready(fwd_fused(x))
    assert y_fused.shape == (2, channels[-1], 8, 8), y_fused.shape
    # bf16 MXU inputs with f32 accumulation vs an f32 reference => bf16-class
    # tolerance; ordering/indexing bugs would produce O(1) errors.
    assert jnp.allclose(y_fused, ref, rtol=2e-2, atol=2e-2), \
        float(jnp.max(jnp.abs(y_fused - ref)))

    # --- general tiled path (used when the fused map would not fit VMEM) ---
    prep_gen = prepare_conv2d_block_params(params)          # no input_hw
    fwd_gen = jax.jit(lambda inp: conv2d_block_forward(inp, prep_gen))
    y_gen = jax.block_until_ready(fwd_gen(x))
    assert y_gen.shape == ref.shape, y_gen.shape
    assert jnp.allclose(y_gen, ref, rtol=2e-2, atol=2e-2), \
        float(jnp.max(jnp.abs(y_gen - ref)))

    print("KERNEL_OK")
</pallas_src>

<mosaic_0001>
module attributes {stable_mosaic.version = 11 : i64} {
  func.func @_affine_kernel(%arg0: i32, %arg1: memref<1x1x1024xf32, #tpu.memory_space<vmem>>, %arg2: memref<1024x512xbf16, #tpu.memory_space<vmem>>, %arg3: memref<1x512xf32, #tpu.memory_space<vmem>>, %arg4: memref<1x1x512xf32, #tpu.memory_space<vmem>>) attributes {dimension_semantics = [#tpu.dimension_semantics<parallel>], iteration_bounds = array<i64: 2>, scalar_prefetch = 0 : i64, scratch_operands = 0 : i64, tpu.core_type = #tpu.core_type<tc>, window_params = [{transform_indices = @transform_0, window_bounds = array<i64: 1, 1, 1024>}, {pipeline_mode = #tpu.pipeline_mode<synchronous>, transform_indices = @transform_1, window_bounds = array<i64: 1024, 512>}, {pipeline_mode = #tpu.pipeline_mode<synchronous>, transform_indices = @transform_2, window_bounds = array<i64: 1, 512>}, {transform_indices = @transform_3, window_bounds = array<i64: 1, 1, 512>}]} {
    %c0 = arith.constant 0 : index
    %c0_0 = arith.constant 0 : index
    %c0_1 = arith.constant 0 : index
    %0 = vector.load %arg1[%c0, %c0_0, %c0_1] : memref<1x1x1024xf32, #tpu.memory_space<vmem>>, vector<1x1x1024xf32>
    %1 = vector.shape_cast %0 : vector<1x1x1024xf32> to vector<1x1024xf32>
    %2 = arith.truncf %1 : vector<1x1024xf32> to vector<1x1024xbf16>
    %c0_2 = arith.constant 0 : index
    %c0_3 = arith.constant 0 : index
    %3 = vector.load %arg2[%c0_2, %c0_3] : memref<1024x512xbf16, #tpu.memory_space<vmem>>, vector<1024x512xbf16>
    %cst = arith.constant dense<0.000000e+00> : vector<1x512xf32>
    %4 = tpu.matmul %2, %3, %cst {dimension_numbers = #tpu.dot_dimension_numbers<[1], [0], [0], [1], [0, 0, 1, 1], [], []>} : vector<1x1024xbf16>, vector<1024x512xbf16>, vector<1x512xf32> -> vector<1x512xf32>
    %c0_4 = arith.constant 0 : index
    %c0_5 = arith.constant 0 : index
    %5 = vector.load %arg3[%c0_4, %c0_5] : memref<1x512xf32, #tpu.memory_space<vmem>>, vector<1x512xf32>
    %6 = arith.addf %4, %5 : vector<1x512xf32>
    %c0_6 = arith.constant 0 : index
    %c0_7 = arith.constant 0 : index
    %c0_8 = arith.constant 0 : index
    %7 = vector.load %arg4[%c0_6, %c0_7, %c0_8] : memref<1x1x512xf32, #tpu.memory_space<vmem>>, vector<1x1x512xf32>
    %8 = vector.shape_cast %7 : vector<1x1x512xf32> to vector<1x512xf32>
    %9 = vector.shape_cast %6 : vector<1x512xf32> to vector<1x1x512xf32>
    tpu.vector_store %arg4[%c0_6, %c0_7, %c0_8], %9 {strides = array<i32>} : memref<1x1x512xf32, #tpu.memory_space<vmem>>, vector<1x1x512xf32>,
    return
  }
  func.func @transform_0(%arg0: i32) -> (i32, i32, i32) {
    %c0_i32 = arith.constant 0 : i32
    %c0_i32_0 = arith.constant 0 : i32
    %c0_i32_1 = arith.constant 0 : i32
    return %arg0, %c0_i32, %c0_i32_0 : i32, i32, i32
  }
  func.func @transform_1(%arg0: i32) -> (i32, i32) {
    %c0_i32 = arith.constant 0 : i32
    %c0_i32_0 = arith.constant 0 : i32
    %c0_i32_1 = arith.constant 0 : i32
    return %c0_i32, %c0_i32_0 : i32, i32
  }
  func.func @transform_2(%arg0: i32) -> (i32, i32) {
    %c0_i32 = arith.constant 0 : i32
    %c0_i32_0 = arith.constant 0 : i32
    %c0_i32_1 = arith.constant 0 : i32
    return %c0_i32, %c0_i32_0 : i32, i32
  }
  func.func @transform_3(%arg0: i32) -> (i32, i32, i32) {
    %c0_i32 = arith.constant 0 : i32
    %c0_i32_0 = arith.constant 0 : i32
    %c0_i32_1 = arith.constant 0 : i32
    return %arg0, %c0_i32, %c0_i32_0 : i32, i32, i32
  }
}

</mosaic_0001>

<bundles_post_ra>
// kernel: squeeze.1
= control target key start
LH: loop header
LB: loop body
LE: loop exit
PB: predicated region body
PF: predicated region fallthrough
CT: control target
= control target key end

     0   :  { %s460_s0 = inlined_call_operand.vmem [shape: f32[2,512], index: 0, kind: input, shape index: {}]   ;;  %s461_s1 = inlined_call_operand.hbm [shape: f32[2,8,8,8], index: 1, kind: output, shape index: {}]  }
   0x1   :  { %v299_v0 = vld [vmem:[%s460_s0 + $0x6] sm:$0x3]  ;;  %v300_v1 = vld [vmem:[%s460_s0 + $0x4] sm:$0x3]  ;;  %v301_v2 = vld [vmem:[%s460_s0 + $0x2] sm:$0x3] }
   0x2   :  { %9 = vst [vmem:[#allocation2 + $0x18] sm:$0x3] %v299_v0  ;;  %14 = vst [vmem:[#allocation2 + $0x10] sm:$0x3] %v300_v1  ;;  %v19_v3 = vld [vmem:[%s460_s0] sm:$0x3] }
   0x3   :  { %18 = vst [vmem:[#allocation2 + $0x8] sm:$0x3] %v301_v2  ;;  %20 = vst [vmem:[#allocation2] sm:$0x3] %v19_v3 }
   0x4   :  { %2 = vsyncpa [#allocation1], 0  ;;  %vm50_vm0 = vcmask 1047556   ;;  %s342_s0 = smov 120   ;;  %s343_s14 = smov 104   ;;  %vm22_vm1 = vcmask 64512  }
   0x5   :  { %s344_s15 = smov 112   ;;  %s345_s16 = smov 96  }
   0x6   :  { %s346_s17 = smov 88   ;;  %s347_s18 = smov 80  }
   0x7   :  { %s348_s19 = smov 72   ;;  %s349_s20 = smov 64  }
   0x8   :  { %s350_s21 = smov 56   ;;  %s351_s22 = smov 48  }
   0x9   :  { %v49_v4 = vld.sshfl [vmem:[#allocation2 + $0x10] sm:$0xff pattern:$0x91800000]   ;;  %s352_s23 = smov 40   ;;  %s353_s24 = smov 32  }
   0xa   :  { %v47_v5 = vld.sshfl [vmem:[#allocation2] sm:$0xff pattern:$0x99999180]   ;;  %v34_v9 = vld [vmem:[#allocation2 + $0x10] sm:$0x3]   ;;  %s354_s25 = smov 24  }
   0xb   :  { %v51_v6 = vsel %vm50_vm0, %v49_v4, %v47_v5  ;;  %v21_v7 = vld [vmem:[#allocation2] sm:$0x3]   ;;  %v27_v8 = vld [vmem:[#allocation2 + $0x8] sm:$0x3]   ;;  %37 = vst.msk [vmem:[#allocation0 + $0x20] sm:$0x1] %vm22_vm1, %v34_v9  }
   0xc   :  { %52 = vrot.lane.b32.xlu0 %v51_v6, %s342_s0  ;;  %84 = vrot.lane.b32.xlu1 %v51_v6, %s343_s14  ;;  %23 = vst.msk [vmem:[#allocation0] sm:$0x1] %vm22_vm1, %v21_v7   ;;  %25 = vst.msk [vmem:[#allocation0 + $0x3f] sm:$0x2] %vm22_vm1, %v21_v7   ;;  %v41_v10 = vld [vmem:[#allocation2 + $0x18] sm:$0x3]  }
   0xd   :  { %30 = vst.msk [vmem:[#allocation0 + $0x10] sm:$0x1] %vm22_vm1, %v27_v8   ;;  %32 = vst.msk [vmem:[#allocation0 + $0x4f] sm:$0x2] %vm22_vm1, %v27_v8   ;;  %s355_s26 = smov 16   ;;  %s356_s27 = smov 8  }
   0xe   :  { %39 = vst.msk [vmem:[#allocation0 + $0x5f] sm:$0x2] %vm22_vm1, %v34_v9   ;;  %44 = vst.msk [vmem:[#allocation0 + $0x30] sm:$0x1] %vm22_vm1, %v41_v10   ;;  %s357_s28 = smov [#allocation0]  }
   0xf   :  { %46 = vst.msk [vmem:[#allocation0 + $0x6f] sm:$0x2] %vm22_vm1, %v41_v10   ;;  %s291_s29 = sshll.u32 %s357_s28, 4  ;;  %s292_s29 = int_to_ptr.vmem [resolvable:$true] %s291_s29 }
  0x10   :  { %68 = vrot.lane.b32.xlu0 %v51_v6, %s344_s15  ;;  %100 = vrot.lane.b32.xlu1 %v51_v6, %s345_s16  ;;  %s318_s30 = scalar_lea.vmem %s292_s29, 2048  ;;  %p323_p1 = scmp.lt.s32.totalorder %s292_s29, %s292_s29 }
  0x11   :  { %p319_p0 = scmp.ne.s32.totalorder %s292_s29, %s318_s30  ;;  %p324_p2 = scmp.lt.s32.totalorder %s318_s30, %s318_s30 }
  0x13   :  { %p325_p3 = por %p324_p2, %p323_p1 }
  0x14   :  { %116 = vrot.lane.b32.xlu0 %v51_v6, %s346_s17  ;;  %132 = vrot.lane.b32.xlu1 %v51_v6, %s347_s18 }
  0x15   :  { %p326_p4 = pnand %p325_p3, %p319_p0 }
  0x18   :  { %148 = vrot.lane.b32.xlu0 %v51_v6, %s348_s19  ;;  %164 = vrot.lane.b32.xlu1 %v51_v6, %s349_s20 }
  0x1c   :  { %180 = vrot.lane.b32.xlu0 %v51_v6, %s350_s21  ;;  %196 = vrot.lane.b32.xlu1 %v51_v6, %s351_s22 }
  0x20   :  { %212 = vrot.lane.b32.xlu0 %v51_v6, %s352_s23  ;;  %228 = vrot.lane.b32.xlu1 %v51_v6, %s353_s24 }
  0x24   :  { %244 = vrot.lane.b32.xlu0 %v51_v6, %s354_s25  ;;  %260 = vrot.lane.b32.xlu1 %v51_v6, %s355_s26 }
  0x28   :  { %276 = vrot.lane.b32.xlu0 %v51_v6, %s356_s27 }
  0x7e   :  { %v53_v11 = vpop.permute.xlu0 %52   ;;  %v85_v12 = vpop.permute.xlu1 %84  }
  0x7f   :  { %56 = vst.msk [vmem:[#allocation0 + $0x1] ss:$16 sm:$0x3] %vm22_vm1, %v53_v11   ;;  %58 = vst.msk [vmem:[#allocation0 + $0x21] ss:$16 sm:$0xc] %vm22_vm1, %v53_v11  }
  0x80   :  { %60 = vst.msk [vmem:[#allocation0 - $0x1f] ss:$16 sm:$0x30] %vm22_vm1, %v53_v11   ;;  %62 = vst.msk [vmem:[#allocation0 + $0x1] ss:$16 sm:$0xc0] %vm22_vm1, %v53_v11  }
  0x81   :  { %88 = vst.msk [vmem:[#allocation0 + $0x3] ss:$16 sm:$0x3] %vm22_vm1, %v85_v12   ;;  %90 = vst.msk [vmem:[#allocation0 + $0x23] ss:$16 sm:$0xc] %vm22_vm1, %v85_v12  }
  0x82   :  { %92 = vst.msk [vmem:[#allocation0 - $0x1d] ss:$16 sm:$0x30] %vm22_vm1, %v85_v12   ;;  %94 = vst.msk [vmem:[#allocation0 + $0x3] ss:$16 sm:$0xc0] %vm22_vm1, %v85_v12   ;;  %v69_v13 = vpop.permute.xlu0 %68   ;;  %v101_v14 = vpop.permute.xlu1 %100  }
  0x83   :  { %72 = vst.msk [vmem:[#allocation0 + $0x2] ss:$16 sm:$0x3] %vm22_vm1, %v69_v13   ;;  %74 = vst.msk [vmem:[#allocation0 + $0x22] ss:$16 sm:$0xc] %vm22_vm1, %v69_v13  }
  0x84   :  { %76 = vst.msk [vmem:[#allocation0 - $0x1e] ss:$16 sm:$0x30] %vm22_vm1, %v69_v13   ;;  %78 = vst.msk [vmem:[#allocation0 + $0x2] ss:$16 sm:$0xc0] %vm22_vm1, %v69_v13  }
  0x85   :  { %104 = vst.msk [vmem:[#allocation0 + $0x4] ss:$16 sm:$0x3] %vm22_vm1, %v101_v14   ;;  %106 = vst.msk [vmem:[#allocation0 + $0x24] ss:$16 sm:$0xc] %vm22_vm1, %v101_v14  }
  0x86   :  { %108 = vst.msk [vmem:[#allocation0 - $0x1c] ss:$16 sm:$0x30] %vm22_vm1, %v101_v14   ;;  %110 = vst.msk [vmem:[#allocation0 + $0x4] ss:$16 sm:$0xc0] %vm22_vm1, %v101_v14   ;;  %v117_v15 = vpop.permute.xlu0 %116   ;;  %v133_v16 = vpop.permute.xlu1 %132  }
  0x87   :  { %120 = vst.msk [vmem:[#allocation0 + $0x5] ss:$16 sm:$0x3] %vm22_vm1, %v117_v15   ;;  %122 = vst.msk [vmem:[#allocation0 + $0x25] ss:$16 sm:$0xc] %vm22_vm1, %v117_v15  }
  0x88   :  { %124 = vst.msk [vmem:[#allocation0 - $0x1b] ss:$16 sm:$0x30] %vm22_vm1, %v117_v15   ;;  %126 = vst.msk [vmem:[#allocation0 + $0x5] ss:$16 sm:$0xc0] %vm22_vm1, %v117_v15  }
  0x89   :  { %136 = vst.msk [vmem:[#allocation0 + $0x6] ss:$16 sm:$0x3] %vm22_vm1, %v133_v16   ;;  %138 = vst.msk [vmem:[#allocation0 + $0x26] ss:$16 sm:$0xc] %vm22_vm1, %v133_v16  }
  0x8a   :  { %140 = vst.msk [vmem:[#allocation0 - $0x1a] ss:$16 sm:$0x30] %vm22_vm1, %v133_v16   ;;  %142 = vst.msk [vmem:[#allocation0 + $0x6] ss:$16 sm:$0xc0] %vm22_vm1, %v133_v16   ;;  %v149_v17 = vpop.permute.xlu0 %148   ;;  %v165_v18 = vpop.permute.xlu1 %164  }
  0x8b   :  { %152 = vst.msk [vmem:[#allocation0 + $0x7] ss:$16 sm:$0x3] %vm22_vm1, %v149_v17   ;;  %154 = vst.msk [vmem:[#allocation0 + $0x27] ss:$16 sm:$0xc] %vm22_vm1, %v149_v17  }
  0x8c   :  { %156 = vst.msk [vmem:[#allocation0 - $0x19] ss:$16 sm:$0x30] %vm22_vm1, %v149_v17   ;;  %158 = vst.msk [vmem:[#allocation0 + $0x7] ss:$16 sm:$0xc0] %vm22_vm1, %v149_v17  }
  0x8d   :  { %168 = vst.msk [vmem:[#allocation0 + $0x8] ss:$16 sm:$0x3] %vm22_vm1, %v165_v18   ;;  %170 = vst.msk [vmem:[#allocation0 + $0x28] ss:$16 sm:$0xc] %vm22_vm1, %v165_v18  }
  0x8e   :  { %172 = vst.msk [vmem:[#allocation0 - $0x18] ss:$16 sm:$0x30] %vm22_vm1, %v165_v18   ;;  %174 = vst.msk [vmem:[#allocation0 + $0x8] ss:$16 sm:$0xc0] %vm22_vm1, %v165_v18   ;;  %v181_v19 = vpop.permute.xlu0 %180   ;;  %v197_v20 = vpop.permute.xlu1 %196  }
  0x8f   :  { %184 = vst.msk [vmem:[#allocation0 + $0x9] ss:$16 sm:$0x3] %vm22_vm1, %v181_v19   ;;  %186 = vst.msk [vmem:[#allocation0 + $0x29] ss:$16 sm:$0xc] %vm22_vm1, %v181_v19  }
  0x90   :  { %188 = vst.msk [vmem:[#allocation0 - $0x17] ss:$16 sm:$0x30] %vm22_vm1, %v181_v19   ;;  %190 = vst.msk [vmem:[#allocation0 + $0x9] ss:$16 sm:$0xc0] %vm22_vm1, %v181_v19  }
  0x91   :  { %200 = vst.msk [vmem:[#allocation0 + $0xa] ss:$16 sm:$0x3] %vm22_vm1, %v197_v20   ;;  %202 = vst.msk [vmem:[#allocation0 + $0x2a] ss:$16 sm:$0xc] %vm22_vm1, %v197_v20  }
  0x92   :  { %204 = vst.msk [vmem:[#allocation0 - $0x16] ss:$16 sm:$0x30] %vm22_vm1, %v197_v20   ;;  %206 = vst.msk [vmem:[#allocation0 + $0xa] ss:$16 sm:$0xc0] %vm22_vm1, %v197_v20   ;;  %v213_v21 = vpop.permute.xlu0 %212   ;;  %v229_v22 = vpop.permute.xlu1 %228  }
  0x93   :  { %216 = vst.msk [vmem:[#allocation0 + $0xb] ss:$16 sm:$0x3] %vm22_vm1, %v213_v21   ;;  %218 = vst.msk [vmem:[#allocation0 + $0x2b] ss:$16 sm:$0xc] %vm22_vm1, %v213_v21  }
  0x94   :  { %220 = vst.msk [vmem:[#allocation0 - $0x15] ss:$16 sm:$0x30] %vm22_vm1, %v213_v21   ;;  %222 = vst.msk [vmem:[#allocation0 + $0xb] ss:$16 sm:$0xc0] %vm22_vm1, %v213_v21  }
  0x95   :  { %232 = vst.msk [vmem:[#allocation0 + $0xc] ss:$16 sm:$0x3] %vm22_vm1, %v229_v22   ;;  %234 = vst.msk [vmem:[#allocation0 + $0x2c] ss:$16 sm:$0xc] %vm22_vm1, %v229_v22  }
  0x96   :  { %236 = vst.msk [vmem:[#allocation0 - $0x14] ss:$16 sm:$0x30] %vm22_vm1, %v229_v22   ;;  %238 = vst.msk [vmem:[#allocation0 + $0xc] ss:$16 sm:$0xc0] %vm22_vm1, %v229_v22   ;;  %v245_v23 = vpop.permute.xlu0 %244   ;;  %v261_v24 = vpop.permute.xlu1 %260  }
  0x97   :  { %248 = vst.msk [vmem:[#allocation0 + $0xd] ss:$16 sm:$0x3] %vm22_vm1, %v245_v23   ;;  %250 = vst.msk [vmem:[#allocation0 + $0x2d] ss:$16 sm:$0xc] %vm22_vm1, %v245_v23  }
  0x98   :  { %252 = vst.msk [vmem:[#allocation0 - $0x13] ss:$16 sm:$0x30] %vm22_vm1, %v245_v23   ;;  %254 = vst.msk [vmem:[#allocation0 + $0xd] ss:$16 sm:$0xc0] %vm22_vm1, %v245_v23  }
  0x99   :  { %264 = vst.msk [vmem:[#allocation0 + $0xe] ss:$16 sm:$0x3] %vm22_vm1, %v261_v24   ;;  %266 = vst.msk [vmem:[#allocation0 + $0x2e] ss:$16 sm:$0xc] %vm22_vm1, %v261_v24  }
  0x9a   :  { %268 = vst.msk [vmem:[#allocation0 - $0x12] ss:$16 sm:$0x30] %vm22_vm1, %v261_v24   ;;  %270 = vst.msk [vmem:[#allocation0 + $0xe] ss:$16 sm:$0xc0] %vm22_vm1, %v261_v24   ;;  %v277_v25 = vpop.permute.xlu0 %276  }
  0x9b   :  { %280 = vst.msk [vmem:[#allocation0 + $0xf] ss:$16 sm:$0x3] %vm22_vm1, %v277_v25   ;;  %282 = vst.msk [vmem:[#allocation0 + $0x2f] ss:$16 sm:$0xc] %vm22_vm1, %v277_v25  }
  0x9c   :  { %284 = vst.msk [vmem:[#allocation0 - $0x11] ss:$16 sm:$0x30] %vm22_vm1, %v277_v25   ;;  %286 = vst.msk [vmem:[#allocation0 + $0xf] ss:$16 sm:$0xc0] %vm22_vm1, %v277_v25  }
  0x9d   :  { %329 = shalt.err (!%p326_p4)
}
  0x9e   :  { %s330_s4 = scalar_lea.hbm %s461_s1, 2048 }
  0x9f   :  { %p331_p5 = scmp.ne.s32.totalorder %s461_s1, %s330_s4  ;;  %p334_p6 = scmp.lt.u32.totalorder %s330_s4, %s461_s1 }
  0xa1   :  { %p336_p7 = pnand %p334_p6, %p331_p5 }
  0xa3   :  { %339 = shalt.err (!%p336_p7)
}
  0xa4   :  { %294 = dma.vmem_to_hbm [thread:$0]  %s292_s29, 2048, %s461_s1, [#allocation1]  }
  0xa5   :  { %340 = dma.done.wait [#allocation1], 2048  }
  0xa6   :  { %341 = vsyncadd [#allocation1], 4294965248 }
  0xa7   :  { %296 = vsyncpa [#allocation1], 1 }

// kernel: _lambda_.1
= control target key start
LH: loop header
LB: loop body
LE: loop exit
PB: predicated region body
PF: predicated region fallthrough
CT: control target
= control target key end

     0   :  { %s2905_s12 = smov 0   ;;  %s3746_s0 = inlined_call_operand.vmem [shape: f32[2,1,1024], index: 0, kind: input, shape index: {}]   ;;  %s3747_s1 = inlined_call_operand.vmem [shape: bf16[1024,512], index: 1, kind: input, shape index: {}]   ;;  %s3748_s2 = inlined_call_operand.vmem [shape: f32[1,512], index: 2, kind: input, shape index: {}]   ;;  %s3749_s3 = inlined_call_operand.vmem [shape: f32[2,1,512], index: 3, kind: output, shape index: {}]  }
   0x1 LB: > { %s2189_s13 = sadd.s32 4294967295, %s2882_s12   ;;  %p2193_p0 = scmp.ge.s32.totalorder %s2882_s12, 1  ;;  %s2882_s12 = sphi %s2905_s12, %s13_s12  }
   0x2   : > { %p136_p1 = scmp.lt.s32.totalorder %s2882_s12, 3 }
   0x4   : > { %p137_p2 = pnand %p2193_p0, %p136_p1 }
   0x5   : > { %v2491_v0 = vld [vmem:[%s3747_s1 + $0x4] ss:$16 sps:$4 sm:$0xff] (!%p137_p2)   ;;  %v2493_v1 = vld [vmem:[%s3747_s1 + $0xc] ss:$16 sps:$4 sm:$0xff] (!%p137_p2)   ;;  %v2495_v2 = vld [vmem:[%s3747_s1] ss:$16 sps:$4 sm:$0xff] (!%p137_p2)   ;;  %v168_v36 = vlaneseq (!%p137_p2) }
   0x6   : > { %140 = sbr.rel (%p137_p2) target bundleno = 486 (0x1e6), region = 32  ;;  %1774 = vmatprep.subr.bf16.mxu0 (!%p137_p2), %v2491_v0  ;;  %v2496_v3 = vld [vmem:[%s3747_s1 + $0x8] ss:$16 sps:$4 sm:$0xff] (!%p137_p2)   ;;  %1938 = vmatprep.subr.bf16.mxu1 (!%p137_p2), %v2493_v1  ;;  %v2497_v4 = vld [vmem:[%s3747_s1 + $0x24] ss:$16 sps:$4 sm:$0xff] (!%p137_p2)   ;;  %p158_p3 = scmp.lt.s32.totalorder (!%p137_p2), %s2189_s13, 1 }
   0x7   : > { %1775 = vmatpush1.bf16.msra.mxu0 (!%p137_p2), %v2495_v2  ;;  %1939 = vmatpush1.bf16.msra.mxu1 (!%p137_p2), %v2496_v3  ;;  %v2499_v5 = vld [vmem:[%s3747_s1 + $0x2c] ss:$16 sps:$4 sm:$0xff] (!%p137_p2)   ;;  %v2501_v6 = vld [vmem:[%s3747_s1 + $0x20] ss:$16 sps:$4 sm:$0xff] (!%p137_p2)   ;;  %v2502_v7 = vld [vmem:[%s3747_s1 + $0x28] ss:$16 sps:$4 sm:$0xff] (!%p137_p2)  }
   0x8   : > { %1776 = vmatprep.subr.bf16.mxu0 (!%p137_p2), %v2497_v4  ;;  %1940 = vmatprep.subr.bf16.mxu1 (!%p137_p2), %v2499_v5  ;;  %v2503_v8 = vld [vmem:[%s3747_s1 + $0x44] ss:$16 sps:$4 sm:$0xff] (!%p137_p2)   ;;  %v2505_v9 = vld [vmem:[%s3747_s1 + $0x4c] ss:$16 sps:$4 sm:$0xff] (!%p137_p2)   ;;  %v2507_v10 = vld [vmem:[%s3747_s1 + $0x40] ss:$16 sps:$4 sm:$0xff] (!%p137_p2)  }
   0x9   : > { %v2508_v11 = vld [vmem:[%s3747_s1 + $0x48] ss:$16 sps:$4 sm:$0xff] (!%p137_p2)   ;;  %v2509_v12 = vld [vmem:[%s3747_s1 + $0x64] ss:$16 sps:$4 sm:$0xff] (!%p137_p2)   ;;  %v2511_v13 = vld [vmem:[%s3747_s1 + $0x6c] ss:$16 sps:$4 sm:$0xff] (!%p137_p2)  }
   0xa   : > { %v2513_v14 = vld [vmem:[%s3747_s1 + $0x60] ss:$16 sps:$4 sm:$0xff] (!%p137_p2)   ;;  %v2514_v15 = vld [vmem:[%s3747_s1 + $0x68] ss:$16 sps:$4 sm:$0xff] (!%p137_p2)   ;;  %v2515_v16 = vld [vmem:[%s3747_s1 + $0x84] ss:$16 sps:$4 sm:$0xff] (!%p137_p2)  }
   0xb   : > { %1777 = vmatpush1.bf16.msra.mxu0 (!%p137_p2), %v2501_v6  ;;  %1941 = vmatpush1.bf16.msra.mxu1 (!%p137_p2), %v2502_v7  ;;  %v2517_v17 = vld [vmem:[%s3747_s1 + $0x8c] ss:$16 sps:$4 sm:$0xff] (!%p137_p2)   ;;  %v2519_v18 = vld [vmem:[%s3747_s1 + $0x80] ss:$16 sps:$4 sm:$0xff] (!%p137_p2)   ;;  %v2520_v19 = vld [vmem:[%s3747_s1 + $0x88] ss:$16 sps:$4 sm:$0xff] (!%p137_p2)  }
   0xc   : > { %1778 = vmatprep.subr.bf16.mxu0 (!%p137_p2), %v2503_v8  ;;  %1942 = vmatprep.subr.bf16.mxu1 (!%p137_p2), %v2505_v9  ;;  %v2521_v20 = vld [vmem:[%s3747_s1 + $0xa4] ss:$16 sps:$4 sm:$0xff] (!%p137_p2)   ;;  %v2523_v21 = vld [vmem:[%s3747_s1 + $0xac] ss:$16 sps:$4 sm:$0xff] (!%p137_p2)   ;;  %v2525_v22 = vld [vmem:[%s3747_s1 + $0xa0] ss:$16 sps:$4 sm:$0xff] (!%p137_p2)  }
   0xd   : > { %v2526_v23 = vld [vmem:[%s3747_s1 + $0xa8] ss:$16 sps:$4 sm:$0xff]   ;;  %v2527_v24 = vld [vmem:[%s3747_s1 + $0xc4] ss:$16 sps:$4 sm:$0xff]   ;;  %v2529_v25 = vld [vmem:[%s3747_s1 + $0xcc] ss:$16 sps:$4 sm:$0xff]  }
   0xe   : > { %v2531_v26 = vld [vmem:[%s3747_s1 + $0xc0] ss:$16 sps:$4 sm:$0xff]   ;;  %v2532_v27 = vld [vmem:[%s3747_s1 + $0xc8] ss:$16 sps:$4 sm:$0xff]   ;;  %v2533_v28 = vld [vmem:[%s3747_s1 + $0xe4] ss:$16 sps:$4 sm:$0xff]  }
   0xf   : > { %1779 = vmatpush1.bf16.msra.mxu0 %v2507_v10  ;;  %1943 = vmatpush1.bf16.msra.mxu1 %v2508_v11  ;;  %v2535_v29 = vld [vmem:[%s3747_s1 + $0xec] ss:$16 sps:$4 sm:$0xff]   ;;  %v2537_v30 = vld [vmem:[%s3747_s1 + $0xe0] ss:$16 sps:$4 sm:$0xff]   ;;  %v2538_v31 = vld [vmem:[%s3747_s1 + $0xe8] ss:$16 sps:$4 sm:$0xff]  }
  0x10   : > { %1780 = vmatprep.subr.bf16.mxu0 %v2509_v12  ;;  %1944 = vmatprep.subr.bf16.mxu1 %v2511_v13  ;;  %v2539_v32 = vld [vmem:[%s3747_s1 + $0x104] ss:$16 sps:$4 sm:$0xff]   ;;  %v2541_v33 = vld [vmem:[%s3747_s1 + $0x10c] ss:$16 sps:$4 sm:$0xff]   ;;  %v2543_v34 = vld [vmem:[%s3747_s1 + $0x100] ss:$16 sps:$4 sm:$0xff]  }
  0x11   : > { %v2544_v35 = vld [vmem:[%s3747_s1 + $0x108] ss:$16 sps:$4 sm:$0xff]   ;;  %v2545_v37 = vld [vmem:[%s3747_s1 + $0x124] ss:$16 sps:$4 sm:$0xff]   ;;  %s3751_s13 = smov (!%p158_p3, %s2189_s13), 1  ;;  %v3037_v40 = vshrl.u32 %v168_v36, 7 }
  0x12   : > { %v2547_v38 = vld [vmem:[%s3747_s1 + $0x12c] ss:$16 sps:$4 sm:$0xff]   ;;  %v2549_v39 = vld [vmem:[%s3747_s1 + $0x120] ss:$16 sps:$4 sm:$0xff]   ;;  %v2550_v41 = vld [vmem:[%s3747_s1 + $0x128] ss:$16 sps:$4 sm:$0xff]  }
  0x13   : > { %1781 = vmatpush1.bf16.msra.mxu0 %v2513_v14  ;;  %1945 = vmatpush1.bf16.msra.mxu1 %v2514_v15  ;;  %v2551_v42 = vld [vmem:[%s3747_s1 + $0x144] ss:$16 sps:$4 sm:$0xff]   ;;  %s2194_s21 = sshll.u32 %s3751_s13, 3  ;;  %v2553_v43 = vld [vmem:[%s3747_s1 + $0x14c] ss:$16 sps:$4 sm:$0xff]   ;;  %v174_v46 = vsub.s32 1, %v3037_v40 }
  0x14   : > { %1782 = vmatprep.subr.bf16.mxu0 %v2515_v16  ;;  %1946 = vmatprep.subr.bf16.mxu1 %v2517_v17  ;;  %v2555_v44 = vld [vmem:[%s3747_s1 + $0x140] ss:$16 sps:$4 sm:$0xff]   ;;  %v2556_v45 = vld [vmem:[%s3747_s1 + $0x148] ss:$16 sps:$4 sm:$0xff]   ;;  %s3058_s30 = scalar_lea.vmem %s3746_s0, %s2194_s21  ;;  %v2557_v47 = vld [vmem:[%s3747_s1 + $0x164] ss:$16 sps:$4 sm:$0xff]  }
  0x15   : > { %v2559_v48 = vld [vmem:[%s3747_s1 + $0x16c] ss:$16 sps:$4 sm:$0xff]   ;;  %v3068_v49 = vld [vmem:[%s3058_s30] sm:$0xff]  ;;  %v2562_v52 = vld [vmem:[%s3747_s1 + $0x168] ss:$16 sps:$4 sm:$0xff]   ;;  %v170_v1 = vsub.s32 0, %v3037_v40 }
  0x16   : > { %v2561_v50 = vld [vmem:[%s3747_s1 + $0x160] ss:$16 sps:$4 sm:$0xff]   ;;  %v175_v51 = vrot.slane %v3068_v49, %v174_v46  ;;  %v2563_v53 = vld [vmem:[%s3747_s1 + $0x184] ss:$16 sps:$4 sm:$0xff]   ;;  %v2565_v54 = vld [vmem:[%s3747_s1 + $0x18c] ss:$16 sps:$4 sm:$0xff]  }
  0x17   : > { %1783 = vmatpush1.bf16.msra.mxu0 %v2519_v18  ;;  %1947 = vmatpush1.bf16.msra.mxu1 %v2520_v19  ;;  %v2567_v56 = vld [vmem:[%s3747_s1 + $0x180] ss:$16 sps:$4 sm:$0xff]   ;;  %v2568_v57 = vld [vmem:[%s3747_s1 + $0x188] ss:$16 sps:$4 sm:$0xff]   ;;  %v2569_v58 = vld [vmem:[%s3747_s1 + $0x1a4] ss:$16 sps:$4 sm:$0xff]   ;;  %v171_v7 = vrot.slane %v3068_v49, %v170_v1 }
  0x18   : > { %1784 = vmatprep.subr.bf16.mxu0 %v2521_v20  ;;  %1948 = vmatprep.subr.bf16.mxu1 %v2523_v21  ;;  %v209_v55 = vpack.c.bf16 %v175_v51, %v175_v51  ;;  %v2571_v59 = vld [vmem:[%s3747_s1 + $0x1ac] ss:$16 sps:$4 sm:$0xff]   ;;  %v2573_v60 = vld [vmem:[%s3747_s1 + $0x1a0] ss:$16 sps:$4 sm:$0xff]   ;;  %v2574_v61 = vld [vmem:[%s3747_s1 + $0x1a8] ss:$16 sps:$4 sm:$0xff]  }
  0x19   : > { %v2575_v62 = vld [vmem:[%s3747_s1 + $0x1c4] ss:$16 sps:$4 sm:$0xff]   ;;  %v2577_v63 = vld [vmem:[%s3747_s1 + $0x1cc] ss:$16 sps:$4 sm:$0xff]   ;;  %v2579_v0 = vld [vmem:[%s3747_s1 + $0x1c0] ss:$16 sps:$4 sm:$0xff]   ;;  %v208_v13 = vpack.c.bf16 %v171_v7, %v171_v7 }
  0x1a   : > { %1806 = vmatprep.mubr.bf16.mxu0 %v209_v55  ;;  %1970 = vmatprep.mubr.bf16.mxu1 %v209_v55  ;;  %v2580_v2 = vld [vmem:[%s3747_s1 + $0x1c8] ss:$16 sps:$4 sm:$0xff]   ;;  %v2581_v3 = vld [vmem:[%s3747_s1 + $0x1e4] ss:$16 sps:$4 sm:$0xff]   ;;  %v2583_v4 = vld [vmem:[%s3747_s1 + $0x1ec] ss:$16 sps:$4 sm:$0xff]  }
  0x1b   : > { %1785 = vmatpush1.bf16.msra.mxu0 %v2525_v22  ;;  %1949 = vmatpush1.bf16.msra.mxu1 %v2526_v23  ;;  %v182_v5 = vsub.s32 3, %v3037_v40  ;;  %v2585_v6 = vld [vmem:[%s3747_s1 + $0x1e0] ss:$16 sps:$4 sm:$0xff]   ;;  %v2586_v8 = vld [vmem:[%s3747_s1 + $0x1e8] ss:$16 sps:$4 sm:$0xff]   ;;  %s2195_s19 = sshll.u32 %s3751_s13, 2 }
  0x1c   : > { %1786 = vmatprep.subr.bf16.mxu0 %v2527_v24  ;;  %1950 = vmatprep.subr.bf16.mxu1 %v2529_v25  ;;  %v2589_v9 = vld [vmem:[%s3747_s1 + $0x204] ss:$16 sps:$4 sm:$0xff]   ;;  %v2592_v10 = vld [vmem:[%s3747_s1 + $0x20c] ss:$16 sps:$4 sm:$0xff]   ;;  %v2587_v12 = vld [vmem:[%s3747_s1 + $0x200] ss:$16 sps:$4 sm:$0xff]   ;;  %s165_s22 = scalar_lea.vmem %s3749_s3, %s2195_s19 }
  0x1d   : > { %v183_v11 = vrot.slane %v3068_v49, %v182_v5  ;;  %v2590_v14 = vld [vmem:[%s3747_s1 + $0x208] ss:$16 sps:$4 sm:$0xff]   ;;  %v2595_v15 = vld [vmem:[%s3747_s1 + $0x224] ss:$16 sps:$4 sm:$0xff]   ;;  %v2598_v16 = vld [vmem:[%s3747_s1 + $0x22c] ss:$16 sps:$4 sm:$0xff]  }
  0x1e   : > { %v2593_v18 = vld [vmem:[%s3747_s1 + $0x220] ss:$16 sps:$4 sm:$0xff]   ;;  %v2596_v19 = vld [vmem:[%s3747_s1 + $0x228] ss:$16 sps:$4 sm:$0xff]   ;;  %v2601_v20 = vld [vmem:[%s3747_s1 + $0x244] ss:$16 sps:$4 sm:$0xff]  }
  0x1f   : > { %1787 = vmatpush1.bf16.msra.mxu0 %v2531_v26  ;;  %1951 = vmatpush1.bf16.msra.mxu1 %v2532_v27  ;;  %v211_v17 = vpack.c.bf16 %v183_v11, %v183_v11  ;;  %v2604_v21 = vld [vmem:[%s3747_s1 + $0x24c] ss:$16 sps:$4 sm:$0xff]   ;;  %v2599_v22 = vld [vmem:[%s3747_s1 + $0x240] ss:$16 sps:$4 sm:$0xff]   ;;  %v2602_v23 = vld [vmem:[%s3747_s1 + $0x248] ss:$16 sps:$4 sm:$0xff]  }
  0x20   : > { %1788 = vmatprep.subr.bf16.mxu0 %v2533_v28  ;;  %1952 = vmatprep.subr.bf16.mxu1 %v2535_v29  ;;  %v2607_v24 = vld [vmem:[%s3747_s1 + $0x264] ss:$16 sps:$4 sm:$0xff]   ;;  %v2610_v25 = vld [vmem:[%s3747_s1 + $0x26c] ss:$16 sps:$4 sm:$0xff]   ;;  %v2605_v26 = vld [vmem:[%s3747_s1 + $0x260] ss:$16 sps:$4 sm:$0xff]  }
  0x21   : > { %v2608_v27 = vld [vmem:[%s3747_s1 + $0x268] ss:$16 sps:$4 sm:$0xff]   ;;  %v2613_v28 = vld [vmem:[%s3747_s1 + $0x284] ss:$16 sps:$4 sm:$0xff]   ;;  %v2616_v29 = vld [vmem:[%s3747_s1 + $0x28c] ss:$16 sps:$4 sm:$0xff]  }
  0x22   : > { %v2638_v51 = vld [vmem:[%s3747_s1 + $0x308] ss:$16 sps:$4 sm:$0xff]   ;;  %v2670_v7 = vld [vmem:[%s3747_s1 + $0x3ac] ss:$16 sps:$4 sm:$0xff]   ;;  %vm2133_vm0 = vcmp.lt.s32.totalorder %v168_v36, 512 }
  0x23   : > { %1789 = vmatpush1.bf16.msra.mxu0 %v2537_v30  ;;  %1953 = vmatpush1.bf16.msra.mxu1 %v2538_v31  ;;  %v2611_v30 = vld [vmem:[%s3747_s1 + $0x280] ss:$16 sps:$4 sm:$0xff]   ;;  %v2614_v31 = vld [vmem:[%s3747_s1 + $0x288] ss:$16 sps:$4 sm:$0xff]   ;;  %v2676_v11 = vld [vmem:[%s3747_s1 + $0x3cc] ss:$16 sps:$4 sm:$0xff]  }
  0x24   : > { %1790 = vmatprep.subr.bf16.mxu0 %v2539_v32  ;;  %1954 = vmatprep.subr.bf16.mxu1 %v2541_v33  ;;  %v2619_v32 = vld [vmem:[%s3747_s1 + $0x2a4] ss:$16 sps:$4 sm:$0xff]   ;;  %v2622_v33 = vld [vmem:[%s3747_s1 + $0x2ac] ss:$16 sps:$4 sm:$0xff]   ;;  %v2644_v55 = vld [vmem:[%s3747_s1 + $0x328] ss:$16 sps:$4 sm:$0xff]  }
  0x27   : > { %1791 = vmatpush1.bf16.msra.mxu0 %v2543_v34  ;;  %1955 = vmatpush1.bf16.msra.mxu1 %v2544_v35  ;;  %v2617_v34 = vld [vmem:[%s3747_s1 + $0x2a0] ss:$16 sps:$4 sm:$0xff]   ;;  %v2620_v35 = vld [vmem:[%s3747_s1 + $0x2a8] ss:$16 sps:$4 sm:$0xff]  }
  0x28   : > { %1792 = vmatprep.subr.bf16.mxu0 %v2545_v37  ;;  %1956 = vmatprep.subr.bf16.mxu1 %v2547_v38  ;;  %v2625_v37 = vld [vmem:[%s3747_s1 + $0x2c4] ss:$16 sps:$4 sm:$0xff]   ;;  %v2628_v38 = vld [vmem:[%s3747_s1 + $0x2cc] ss:$16 sps:$4 sm:$0xff]  }
  0x2b   : > { %1793 = vmatpush1.bf16.msra.mxu0 %v2549_v39  ;;  %1957 = vmatpush1.bf16.msra.mxu1 %v2550_v41  ;;  %v2623_v39 = vld [vmem:[%s3747_s1 + $0x2c0] ss:$16 sps:$4 sm:$0xff]   ;;  %v2626_v41 = vld [vmem:[%s3747_s1 + $0x2c8] ss:$16 sps:$4 sm:$0xff]  }
  0x2c   : > { %1794 = vmatprep.subr.bf16.mxu0 %v2551_v42  ;;  %1958 = vmatprep.subr.bf16.mxu1 %v2553_v43  ;;  %v2631_v42 = vld [vmem:[%s3747_s1 + $0x2e4] ss:$16 sps:$4 sm:$0xff]   ;;  %v2634_v43 = vld [vmem:[%s3747_s1 + $0x2ec] ss:$16 sps:$4 sm:$0xff]  }
  0x2f   : > { %1795 = vmatpush1.bf16.msra.mxu0 %v2555_v44  ;;  %1959 = vmatpush1.bf16.msra.mxu1 %v2556_v45  ;;  %v2629_v44 = vld [vmem:[%s3747_s1 + $0x2e0] ss:$16 sps:$4 sm:$0xff]   ;;  %v2632_v45 = vld [vmem:[%s3747_s1 + $0x2e8] ss:$16 sps:$4 sm:$0xff]  }
  0x30   : > { %1796 = vmatprep.subr.bf16.mxu0 %v2557_v47  ;;  %1960 = vmatprep.subr.bf16.mxu1 %v2559_v48  ;;  %v2637_v47 = vld [vmem:[%s3747_s1 + $0x304] ss:$16 sps:$4 sm:$0xff]   ;;  %v2640_v48 = vld [vmem:[%s3747_s1 + $0x30c] ss:$16 sps:$4 sm:$0xff]  }
  0x33   : > { %1797 = vmatpush1.bf16.msra.mxu0 %v2561_v50  ;;  %1961 = vmatpush1.bf16.msra.mxu1 %v2562_v52  ;;  %v2635_v50 = vld [vmem:[%s3747_s1 + $0x300] ss:$16 sps:$4 sm:$0xff]   ;;  %v2643_v52 = vld [vmem:[%s3747_s1 + $0x324] ss:$16 sps:$4 sm:$0xff]  }
  0x34   : > { %1798 = vmatprep.subr.bf16.mxu0 %v2563_v53  ;;  %1962 = vmatprep.subr.bf16.mxu1 %v2565_v54  ;;  %v2646_v53 = vld [vmem:[%s3747_s1 + $0x32c] ss:$16 sps:$4 sm:$0xff]   ;;  %v2641_v54 = vld [vmem:[%s3747_s1 + $0x320] ss:$16 sps:$4 sm:$0xff]  }
  0x37   : > { %1799 = vmatpush1.bf16.msra.mxu0 %v2567_v56  ;;  %1963 = vmatpush1.bf16.msra.mxu1 %v2568_v57  ;;  %v2649_v56 = vld [vmem:[%s3747_s1 + $0x344] ss:$16 sps:$4 sm:$0xff]   ;;  %v2652_v57 = vld [vmem:[%s3747_s1 + $0x34c] ss:$16 sps:$4 sm:$0xff]  }
  0x38   : > { %1800 = vmatprep.subr.bf16.mxu0 %v2569_v58  ;;  %1964 = vmatprep.subr.bf16.mxu1 %v2571_v59  ;;  %v2647_v58 = vld [vmem:[%s3747_s1 + $0x340] ss:$16 sps:$4 sm:$0xff]   ;;  %v2650_v59 = vld [vmem:[%s3747_s1 + $0x348] ss:$16 sps:$4 sm:$0xff]  }
  0x3b   : > { %1801 = vmatpush1.bf16.msra.mxu0 %v2573_v60  ;;  %1965 = vmatpush1.bf16.msra.mxu1 %v2574_v61  ;;  %v2655_v60 = vld [vmem:[%s3747_s1 + $0x364] ss:$16 sps:$4 sm:$0xff]   ;;  %v2658_v61 = vld [vmem:[%s3747_s1 + $0x36c] ss:$16 sps:$4 sm:$0xff]  }
  0x3c   : > { %1802 = vmatprep.subr.bf16.mxu0 %v2575_v62  ;;  %1966 = vmatprep.subr.bf16.mxu1 %v2577_v63  ;;  %v2653_v62 = vld [vmem:[%s3747_s1 + $0x360] ss:$16 sps:$4 sm:$0xff]   ;;  %v2656_v63 = vld [vmem:[%s3747_s1 + $0x368] ss:$16 sps:$4 sm:$0xff]  }
  0x3f   : > { %1803 = vmatpush1.bf16.msra.mxu0 %v2579_v0  ;;  %1967 = vmatpush1.bf16.msra.mxu1 %v2580_v2  ;;  %v2661_v0 = vld [vmem:[%s3747_s1 + $0x384] ss:$16 sps:$4 sm:$0xff]   ;;  %v2664_v2 = vld [vmem:[%s3747_s1 + $0x38c] ss:$16 sps:$4 sm:$0xff]  }
  0x40   : > { %1804 = vmatprep.subr.bf16.mxu0 %v2581_v3  ;;  %1968 = vmatprep.subr.bf16.mxu1 %v2583_v4  ;;  %v2659_v3 = vld [vmem:[%s3747_s1 + $0x380] ss:$16 sps:$4 sm:$0xff]   ;;  %v2662_v4 = vld [vmem:[%s3747_s1 + $0x388] ss:$16 sps:$4 sm:$0xff]  }
  0x43   : > { %1805 = vmatpush1.bf16.msra.mxu0 %v2585_v6  ;;  %1969 = vmatpush1.bf16.msra.mxu1 %v2586_v8  ;;  %v2667_v6 = vld [vmem:[%s3747_s1 + $0x3a4] ss:$16 sps:$4 sm:$0xff]   ;;  %v2665_v8 = vld [vmem:[%s3747_s1 + $0x3a0] ss:$16 sps:$4 sm:$0xff]  }
  0x44   : > { %1815 = vmatprep.subr.bf16.mxu0 %v2589_v9  ;;  %1979 = vmatprep.subr.bf16.mxu1 %v2592_v10  ;;  %v2668_v9 = vld [vmem:[%s3747_s1 + $0x3a8] ss:$16 sps:$4 sm:$0xff]   ;;  %v2673_v10 = vld [vmem:[%s3747_s1 + $0x3c4] ss:$16 sps:$4 sm:$0xff]  }
  0x46   : > { %1807 = vmatmul.mubr.bf16.vlgmr.msra.gmra.mrb[0].mxu0 %v208_v13  ;;  %1971 = vmatmul.mubr.bf16.vlgmr.msra.gmra.mrb[0].mxu1 %v208_v13  ;;  %v178_v13 = vsub.s32 2, %v3037_v40 }
  0x47   : > { %1816 = vmatpush1.bf16.msra.mxu0 %v2587_v12  ;;  %1980 = vmatpush1.bf16.msra.mxu1 %v2590_v14  ;;  %v2671_v12 = vld [vmem:[%s3747_s1 + $0x3c0] ss:$16 sps:$4 sm:$0xff]   ;;  %v2674_v14 = vld [vmem:[%s3747_s1 + $0x3c8] ss:$16 sps:$4 sm:$0xff]  }
  0x48   : > { %1817 = vmatprep.subr.bf16.mxu0 %v2595_v15  ;;  %1981 = vmatprep.subr.bf16.mxu1 %v2598_v16  ;;  %v2679_v15 = vld [vmem:[%s3747_s1 + $0x3e4] ss:$16 sps:$4 sm:$0xff]   ;;  %v2682_v16 = vld [vmem:[%s3747_s1 + $0x3ec] ss:$16 sps:$4 sm:$0xff]  }
  0x49   : > { %1847 = vmatprep.mubr.bf16.mxu0 %v211_v17  ;;  %2011 = vmatprep.mubr.bf16.mxu1 %v211_v17  ;;  %v190_v17 = vsub.s32 5, %v3037_v40 }
  0x4b   : > { %1818 = vmatpush1.bf16.msra.mxu0 %v2593_v18  ;;  %1982 = vmatpush1.bf16.msra.mxu1 %v2596_v19  ;;  %v2677_v18 = vld [vmem:[%s3747_s1 + $0x3e0] ss:$16 sps:$4 sm:$0xff]   ;;  %v179_v19 = vrot.slane %v3068_v49, %v178_v13 }
  0x4c   : > { %1819 = vmatprep.subr.bf16.mxu0 %v2601_v20  ;;  %1983 = vmatprep.subr.bf16.mxu1 %v2604_v21  ;;  %v2680_v20 = vld [vmem:[%s3747_s1 + $0x3e8] ss:$16 sps:$4 sm:$0xff]   ;;  %v2685_v21 = vld [vmem:[%s3747_s1 + $0x404] ss:$16 sps:$4 sm:$0xff]  }
  0x4f   : > { %1820 = vmatpush1.bf16.msra.mxu0 %v2599_v22  ;;  %1984 = vmatpush1.bf16.msra.mxu1 %v2602_v23  ;;  %v2688_v22 = vld [vmem:[%s3747_s1 + $0x40c] ss:$16 sps:$4 sm:$0xff]   ;;  %v191_v23 = vrot.slane %v3068_v49, %v190_v17  ;;  %v2755_v17 = vld [vmem:[%s3747_s1 + $0x580] ss:$16 sps:$4 sm:$0xff]  }
  0x50   : > { %1821 = vmatprep.subr.bf16.mxu0 %v2607_v24  ;;  %1985 = vmatprep.subr.bf16.mxu1 %v2610_v25  ;;  %v2683_v24 = vld [vmem:[%s3747_s1 + $0x400] ss:$16 sps:$4 sm:$0xff]   ;;  %v210_v25 = vpack.c.bf16 %v179_v19, %v179_v19  ;;  %v2763_v19 = vld [vmem:[%s3747_s1 + $0x5a4] ss:$16 sps:$4 sm:$0xff]  }
  0x53   : > { %1822 = vmatpush1.bf16.msra.mxu0 %v2605_v26  ;;  %1986 = vmatpush1.bf16.msra.mxu1 %v2608_v27  ;;  %v2686_v26 = vld [vmem:[%s3747_s1 + $0x408] ss:$16 sps:$4 sm:$0xff]   ;;  %v2691_v27 = vld [vmem:[%s3747_s1 + $0x424] ss:$16 sps:$4 sm:$0xff]  }
  0x54   : > { %1823 = vmatprep.subr.bf16.mxu0 %v2613_v28  ;;  %1987 = vmatprep.subr.bf16.mxu1 %v2616_v29  ;;  %v2694_v28 = vld [vmem:[%s3747_s1 + $0x42c] ss:$16 sps:$4 sm:$0xff]   ;;  %v213_v29 = vpack.c.bf16 %v191_v23, %v191_v23  ;;  %v2769_v23 = vld [vmem:[%s3747_s1 + $0x5c4] ss:$16 sps:$4 sm:$0xff]  }
  0x57   : > { %1824 = vmatpush1.bf16.msra.mxu0 %v2611_v30  ;;  %1988 = vmatpush1.bf16.msra.mxu1 %v2614_v31  ;;  %v2689_v30 = vld [vmem:[%s3747_s1 + $0x420] ss:$16 sps:$4 sm:$0xff]   ;;  %v2692_v31 = vld [vmem:[%s3747_s1 + $0x428] ss:$16 sps:$4 sm:$0xff]  }
  0x58   : > { %1825 = vmatprep.subr.bf16.mxu0 %v2619_v32  ;;  %1989 = vmatprep.subr.bf16.mxu1 %v2622_v33  ;;  %v2697_v32 = vld [vmem:[%s3747_s1 + $0x444] ss:$16 sps:$4 sm:$0xff]   ;;  %v2700_v33 = vld [vmem:[%s3747_s1 + $0x44c] ss:$16 sps:$4 sm:$0xff]  }
  0x5b   : > { %1826 = vmatpush1.bf16.msra.mxu0 %v2617_v34  ;;  %1990 = vmatpush1.bf16.msra.mxu1 %v2620_v35  ;;  %v2695_v34 = vld [vmem:[%s3747_s1 + $0x440] ss:$16 sps:$4 sm:$0xff]   ;;  %v2698_v35 = vld [vmem:[%s3747_s1 + $0x448] ss:$16 sps:$4 sm:$0xff]  }
  0x5c   : > { %1827 = vmatprep.subr.bf16.mxu0 %v2625_v37  ;;  %1991 = vmatprep.subr.bf16.mxu1 %v2628_v38  ;;  %v2703_v37 = vld [vmem:[%s3747_s1 + $0x464] ss:$16 sps:$4 sm:$0xff]   ;;  %v2706_v38 = vld [vmem:[%s3747_s1 + $0x46c] ss:$16 sps:$4 sm:$0xff]  }
  0x5f   : > { %1828 = vmatpush1.bf16.msra.mxu0 %v2623_v39  ;;  %1992 = vmatpush1.bf16.msra.mxu1 %v2626_v41  ;;  %v2701_v39 = vld [vmem:[%s3747_s1 + $0x460] ss:$16 sps:$4 sm:$0xff]   ;;  %v2704_v41 = vld [vmem:[%s3747_s1 + $0x468] ss:$16 sps:$4 sm:$0xff]  }
  0x60   : > { %1829 = vmatprep.subr.bf16.mxu0 %v2631_v42  ;;  %1993 = vmatprep.subr.bf16.mxu1 %v2634_v43  ;;  %v2709_v42 = vld [vmem:[%s3747_s1 + $0x484] ss:$16 sps:$4 sm:$0xff]   ;;  %v2712_v43 = vld [vmem:[%s3747_s1 + $0x48c] ss:$16 sps:$4 sm:$0xff]  }
  0x63   : > { %1830 = vmatpush1.bf16.msra.mxu0 %v2629_v44  ;;  %1994 = vmatpush1.bf16.msra.mxu1 %v2632_v45  ;;  %v2707_v44 = vld [vmem:[%s3747_s1 + $0x480] ss:$16 sps:$4 sm:$0xff]   ;;  %v2710_v45 = vld [vmem:[%s3747_s1 + $0x488] ss:$16 sps:$4 sm:$0xff]  }
  0x64   : > { %1831 = vmatprep.subr.bf16.mxu0 %v2637_v47  ;;  %1995 = vmatprep.subr.bf16.mxu1 %v2640_v48  ;;  %v2715_v47 = vld [vmem:[%s3747_s1 + $0x4a4] ss:$16 sps:$4 sm:$0xff]   ;;  %v2718_v48 = vld [vmem:[%s3747_s1 + $0x4ac] ss:$16 sps:$4 sm:$0xff]  }
  0x67   : > { %1832 = vmatpush1.bf16.msra.mxu0 %v2635_v50  ;;  %1996 = vmatpush1.bf16.msra.mxu1 %v2638_v51  ;;  %v2713_v50 = vld [vmem:[%s3747_s1 + $0x4a0] ss:$16 sps:$4 sm:$0xff]   ;;  %v2716_v51 = vld [vmem:[%s3747_s1 + $0x4a8] ss:$16 sps:$4 sm:$0xff]  }
  0x68   : > { %1833 = vmatprep.subr.bf16.mxu0 %v2643_v52  ;;  %1997 = vmatprep.subr.bf16.mxu1 %v2646_v53  ;;  %v2721_v52 = vld [vmem:[%s3747_s1 + $0x4c4] ss:$16 sps:$4 sm:$0xff]   ;;  %v2724_v53 = vld [vmem:[%s3747_s1 + $0x4cc] ss:$16 sps:$4 sm:$0xff]  }
  0x6b   : > { %1834 = vmatpush1.bf16.msra.mxu0 %v2641_v54  ;;  %1998 = vmatpush1.bf16.msra.mxu1 %v2644_v55  ;;  %v2719_v54 = vld [vmem:[%s3747_s1 + $0x4c0] ss:$16 sps:$4 sm:$0xff]   ;;  %v2722_v55 = vld [vmem:[%s3747_s1 + $0x4c8] ss:$16 sps:$4 sm:$0xff]  }
  0x6c   : > { %1835 = vmatprep.subr.bf16.mxu0 %v2649_v56  ;;  %1999 = vmatprep.subr.bf16.mxu1 %v2652_v57  ;;  %v2727_v56 = vld [vmem:[%s3747_s1 + $0x4e4] ss:$16 sps:$4 sm:$0xff]   ;;  %v2730_v57 = vld [vmem:[%s3747_s1 + $0x4ec] ss:$16 sps:$4 sm:$0xff]  }
  0x6f   : > { %1836 = vmatpush1.bf16.msra.mxu0 %v2647_v58  ;;  %2000 = vmatpush1.bf16.msra.mxu1 %v2650_v59  ;;  %v2725_v58 = vld [vmem:[%s3747_s1 + $0x4e0] ss:$16 sps:$4 sm:$0xff]   ;;  %v2728_v59 = vld [vmem:[%s3747_s1 + $0x4e8] ss:$16 sps:$4 sm:$0xff]  }
  0x70   : > { %1837 = vmatprep.subr.bf16.mxu0 %v2655_v60  ;;  %2001 = vmatprep.subr.bf16.mxu1 %v2658_v61  ;;  %v2733_v60 = vld [vmem:[%s3747_s1 + $0x504] ss:$16 sps:$4 sm:$0xff]   ;;  %v2736_v61 = vld [vmem:[%s3747_s1 + $0x50c] ss:$16 sps:$4 sm:$0xff]  }
  0x73   : > { %1838 = vmatpush1.bf16.msra.mxu0 %v2653_v62  ;;  %2002 = vmatpush1.bf16.msra.mxu1 %v2656_v63  ;;  %v2731_v62 = vld [vmem:[%s3747_s1 + $0x500] ss:$16 sps:$4 sm:$0xff]   ;;  %v2734_v63 = vld [vmem:[%s3747_s1 + $0x508] ss:$16 sps:$4 sm:$0xff]  }
  0x74   : > { %1839 = vmatprep.subr.bf16.mxu0 %v2661_v0  ;;  %2003 = vmatprep.subr.bf16.mxu1 %v2664_v2  ;;  %v2739_v0 = vld [vmem:[%s3747_s1 + $0x524] ss:$16 sps:$4 sm:$0xff]   ;;  %v2742_v2 = vld [vmem:[%s3747_s1 + $0x52c] ss:$16 sps:$4 sm:$0xff]  }
  0x77   : > { %1840 = vmatpush1.bf16.msra.mxu0 %v2659_v3  ;;  %2004 = vmatpush1.bf16.msra.mxu1 %v2662_v4  ;;  %v2737_v3 = vld [vmem:[%s3747_s1 + $0x520] ss:$16 sps:$4 sm:$0xff]   ;;  %v2740_v4 = vld [vmem:[%s3747_s1 + $0x528] ss:$16 sps:$4 sm:$0xff]  }
  0x78   : > { %1841 = vmatprep.subr.bf16.mxu0 %v2667_v6  ;;  %2005 = vmatprep.subr.bf16.mxu1 %v2670_v7  ;;  %v2745_v6 = vld [vmem:[%s3747_s1 + $0x544] ss:$16 sps:$4 sm:$0xff]   ;;  %v2748_v7 = vld [vmem:[%s3747_s1 + $0x54c] ss:$16 sps:$4 sm:$0xff]  }
  0x7b   : > { %1842 = vmatpush1.bf16.msra.mxu0 %v2665_v8  ;;  %2006 = vmatpush1.bf16.msra.mxu1 %v2668_v9  ;;  %v2743_v8 = vld [vmem:[%s3747_s1 + $0x540] ss:$16 sps:$4 sm:$0xff]   ;;  %v2746_v9 = vld [vmem:[%s3747_s1 + $0x548] ss:$16 sps:$4 sm:$0xff]  }
  0x7c   : > { %1843 = vmatprep.subr.bf16.mxu0 %v2673_v10  ;;  %2007 = vmatprep.subr.bf16.mxu1 %v2676_v11  ;;  %v2751_v10 = vld [vmem:[%s3747_s1 + $0x564] ss:$16 sps:$4 sm:$0xff]   ;;  %v2754_v11 = vld [vmem:[%s3747_s1 + $0x56c] ss:$16 sps:$4 sm:$0xff]  }
  0x7f   : > { %1844 = vmatpush1.bf16.msra.mxu0 %v2671_v12  ;;  %2008 = vmatpush1.bf16.msra.mxu1 %v2674_v14  ;;  %v2749_v12 = vld [vmem:[%s3747_s1 + $0x560] ss:$16 sps:$4 sm:$0xff]   ;;  %v2752_v14 = vld [vmem:[%s3747_s1 + $0x568] ss:$16 sps:$4 sm:$0xff]  }
  0x80   : > { %1845 = vmatprep.subr.bf16.mxu0 %v2679_v15  ;;  %2009 = vmatprep.subr.bf16.mxu1 %v2682_v16  ;;  %v2757_v15 = vld [vmem:[%s3747_s1 + $0x584] ss:$16 sps:$4 sm:$0xff]   ;;  %v2760_v16 = vld [vmem:[%s3747_s1 + $0x58c] ss:$16 sps:$4 sm:$0xff]  }
  0x83   : > { %1846 = vmatpush1.bf16.msra.mxu0 %v2677_v18  ;;  %2010 = vmatpush1.bf16.msra.mxu1 %v2680_v20  ;;  %v2758_v18 = vld [vmem:[%s3747_s1 + $0x588] ss:$16 sps:$4 sm:$0xff]   ;;  %v2766_v20 = vld [vmem:[%s3747_s1 + $0x5ac] ss:$16 sps:$4 sm:$0xff]  }
  0x84   : > { %1856 = vmatprep.subr.bf16.mxu0 %v2685_v21  ;;  %2020 = vmatprep.subr.bf16.mxu1 %v2688_v22  ;;  %v2761_v21 = vld [vmem:[%s3747_s1 + $0x5a0] ss:$16 sps:$4 sm:$0xff]   ;;  %v2764_v22 = vld [vmem:[%s3747_s1 + $0x5a8] ss:$16 sps:$4 sm:$0xff]  }
  0x86   : > { %1848 = vmatmul.mubr.bf16.vlgmr.msra.gmra.mrb[0].mxu0 %v210_v25  ;;  %2012 = vmatmul.mubr.bf16.vlgmr.msra.gmra.mrb[0].mxu1 %v210_v25  ;;  %v186_v25 = vsub.s32 4, %v3037_v40 }
  0x87   : > { %1857 = vmatpush1.bf16.msra.mxu0 %v2683_v24  ;;  %2021 = vmatpush1.bf16.msra.mxu1 %v2686_v26  ;;  %v2772_v24 = vld [vmem:[%s3747_s1 + $0x5cc] ss:$16 sps:$4 sm:$0xff]   ;;  %v2767_v26 = vld [vmem:[%s3747_s1 + $0x5c0] ss:$16 sps:$4 sm:$0xff]  }
  0x88   : > { %1858 = vmatprep.subr.bf16.mxu0 %v2691_v27  ;;  %2022 = vmatprep.subr.bf16.mxu1 %v2694_v28  ;;  %v2770_v27 = vld [vmem:[%s3747_s1 + $0x5c8] ss:$16 sps:$4 sm:$0xff]   ;;  %v2775_v28 = vld [vmem:[%s3747_s1 + $0x5e4] ss:$16 sps:$4 sm:$0xff]  }
  0x89   : > { %1888 = vmatprep.mubr.bf16.mxu0 %v213_v29  ;;  %2052 = vmatprep.mubr.bf16.mxu1 %v213_v29  ;;  %v2778_v29 = vld [vmem:[%s3747_s1 + $0x5ec] ss:$16 sps:$4 sm:$0xff]  }
  0x8b   : > { %1859 = vmatpush1.bf16.msra.mxu0 %v2689_v30  ;;  %2023 = vmatpush1.bf16.msra.mxu1 %v2692_v31  ;;  %v198_v30 = vsub.s32 7, %v3037_v40  ;;  %v187_v31 = vrot.slane %v3068_v49, %v186_v25  ;;  %v2784_v49 = vld [vmem:[%s3747_s1 + $0x60c] ss:$16 sps:$4 sm:$0xff]  }
  0x8c   : > { %1860 = vmatprep.subr.bf16.mxu0 %v2697_v32  ;;  %2024 = vmatprep.subr.bf16.mxu1 %v2700_v33  ;;  %v2773_v32 = vld [vmem:[%s3747_s1 + $0x5e0] ss:$16 sps:$4 sm:$0xff]   ;;  %v2776_v33 = vld [vmem:[%s3747_s1 + $0x5e8] ss:$16 sps:$4 sm:$0xff]   ;;  %v2850_v25 = vld [vmem:[%s3747_s1 + $0x76c] ss:$16 sps:$4 sm:$0xff]  }
  0x8f   : > { %1861 = vmatpush1.bf16.msra.mxu0 %v2695_v34  ;;  %2025 = vmatpush1.bf16.msra.mxu1 %v2698_v35  ;;  %v2781_v34 = vld [vmem:[%s3747_s1 + $0x604] ss:$16 sps:$4 sm:$0xff]  }
  0x90   : > { %1862 = vmatprep.subr.bf16.mxu0 %v2703_v37  ;;  %2026 = vmatprep.subr.bf16.mxu1 %v2706_v38  ;;  %v3535_v35 = vld [vmem:[%s3058_s30] sm:$0xff]  ;;  %v212_v38 = vpack.c.bf16 %v187_v31, %v187_v31  ;;  %v2854_v31 = vld [vmem:[%s3747_s1 + $0x788] ss:$16 sps:$4 sm:$0xff]  }
  0x91   : > { %v199_v37 = vrot.slane %v3535_v35, %v198_v30  ;;  %v2851_v30 = vld [vmem:[%s3747_s1 + $0x780] ss:$16 sps:$4 sm:$0xff]  }
  0x93   : > { %1863 = vmatpush1.bf16.msra.mxu0 %v2701_v39  ;;  %2027 = vmatpush1.bf16.msra.mxu1 %v2704_v41  ;;  %v2779_v39 = vld [vmem:[%s3747_s1 + $0x600] ss:$16 sps:$4 sm:$0xff]   ;;  %v2782_v41 = vld [vmem:[%s3747_s1 + $0x608] ss:$16 sps:$4 sm:$0xff]  }
  0x94   : > { %1864 = vmatprep.subr.bf16.mxu0 %v2709_v42  ;;  %2028 = vmatprep.subr.bf16.mxu1 %v2712_v43  ;;  %v2787_v42 = vld [vmem:[%s3747_s1 + $0x624] ss:$16 sps:$4 sm:$0xff]   ;;  %v2790_v43 = vld [vmem:[%s3747_s1 + $0x62c] ss:$16 sps:$4 sm:$0xff]  }
  0x97   : > { %1865 = vmatpush1.bf16.msra.mxu0 %v2707_v44  ;;  %2029 = vmatpush1.bf16.msra.mxu1 %v2710_v45  ;;  %v215_v44 = vpack.c.bf16 %v199_v37, %v199_v37  ;;  %v2785_v45 = vld [vmem:[%s3747_s1 + $0x620] ss:$16 sps:$4 sm:$0xff]   ;;  %v2865_v37 = vld [vmem:[%s3747_s1 + $0x7c4] ss:$16 sps:$4 sm:$0xff]  }
  0x98   : > { %1866 = vmatprep.subr.bf16.mxu0 %v2715_v47  ;;  %2030 = vmatprep.subr.bf16.mxu1 %v2718_v48  ;;  %v2788_v47 = vld [vmem:[%s3747_s1 + $0x628] ss:$16 sps:$4 sm:$0xff]   ;;  %v2793_v48 = vld [vmem:[%s3747_s1 + $0x644] ss:$16 sps:$4 sm:$0xff]  }
  0x9b   : > { %1867 = vmatpush1.bf16.msra.mxu0 %v2713_v50  ;;  %2031 = vmatpush1.bf16.msra.mxu1 %v2716_v51  ;;  %v2796_v50 = vld [vmem:[%s3747_s1 + $0x64c] ss:$16 sps:$4 sm:$0xff]   ;;  %v2791_v51 = vld [vmem:[%s3747_s1 + $0x640] ss:$16 sps:$4 sm:$0xff]  }
  0x9c   : > { %1868 = vmatprep.subr.bf16.mxu0 %v2721_v52  ;;  %2032 = vmatprep.subr.bf16.mxu1 %v2724_v53  ;;  %v2794_v52 = vld [vmem:[%s3747_s1 + $0x648] ss:$16 sps:$4 sm:$0xff]   ;;  %v2799_v53 = vld [vmem:[%s3747_s1 + $0x664] ss:$16 sps:$4 sm:$0xff]  }
  0x9f   : > { %1869 = vmatpush1.bf16.msra.mxu0 %v2719_v54  ;;  %2033 = vmatpush1.bf16.msra.mxu1 %v2722_v55  ;;  %v2802_v54 = vld [vmem:[%s3747_s1 + $0x66c] ss:$16 sps:$4 sm:$0xff]   ;;  %v2797_v55 = vld [vmem:[%s3747_s1 + $0x660] ss:$16 sps:$4 sm:$0xff]  }
  0xa0   : > { %1870 = vmatprep.subr.bf16.mxu0 %v2727_v56  ;;  %2034 = vmatprep.subr.bf16.mxu1 %v2730_v57  ;;  %v2800_v56 = vld [vmem:[%s3747_s1 + $0x668] ss:$16 sps:$4 sm:$0xff]   ;;  %v2805_v57 = vld [vmem:[%s3747_s1 + $0x684] ss:$16 sps:$4 sm:$0xff]  }
  0xa3   : > { %1871 = vmatpush1.bf16.msra.mxu0 %v2725_v58  ;;  %2035 = vmatpush1.bf16.msra.mxu1 %v2728_v59  ;;  %v2808_v58 = vld [vmem:[%s3747_s1 + $0x68c] ss:$16 sps:$4 sm:$0xff]   ;;  %v2803_v59 = vld [vmem:[%s3747_s1 + $0x680] ss:$16 sps:$4 sm:$0xff]  }
  0xa4   : > { %1872 = vmatprep.subr.bf16.mxu0 %v2733_v60  ;;  %2036 = vmatprep.subr.bf16.mxu1 %v2736_v61  ;;  %v2806_v60 = vld [vmem:[%s3747_s1 + $0x688] ss:$16 sps:$4 sm:$0xff]   ;;  %v2811_v61 = vld [vmem:[%s3747_s1 + $0x6a4] ss:$16 sps:$4 sm:$0xff]  }
  0xa7   : > { %1873 = vmatpush1.bf16.msra.mxu0 %v2731_v62  ;;  %2037 = vmatpush1.bf16.msra.mxu1 %v2734_v63  ;;  %v2814_v62 = vld [vmem:[%s3747_s1 + $0x6ac] ss:$16 sps:$4 sm:$0xff]   ;;  %v2809_v63 = vld [vmem:[%s3747_s1 + $0x6a0] ss:$16 sps:$4 sm:$0xff]  }
  0xa8   : > { %1874 = vmatprep.subr.bf16.mxu0 %v2739_v0  ;;  %2038 = vmatprep.subr.bf16.mxu1 %v2742_v2  ;;  %v2812_v0 = vld [vmem:[%s3747_s1 + $0x6a8] ss:$16 sps:$4 sm:$0xff]   ;;  %v2817_v2 = vld [vmem:[%s3747_s1 + $0x6c4] ss:$16 sps:$4 sm:$0xff]  }
  0xab   : > { %1875 = vmatpush1.bf16.msra.mxu0 %v2737_v3  ;;  %2039 = vmatpush1.bf16.msra.mxu1 %v2740_v4  ;;  %v2820_v3 = vld [vmem:[%s3747_s1 + $0x6cc] ss:$16 sps:$4 sm:$0xff]   ;;  %v2815_v4 = vld [vmem:[%s3747_s1 + $0x6c0] ss:$16 sps:$4 sm:$0xff]  }
  0xac   : > { %1876 = vmatprep.subr.bf16.mxu0 %v2745_v6  ;;  %2040 = vmatprep.subr.bf16.mxu1 %v2748_v7  ;;  %v2818_v6 = vld [vmem:[%s3747_s1 + $0x6c8] ss:$16 sps:$4 sm:$0xff]   ;;  %v2823_v7 = vld [vmem:[%s3747_s1 + $0x6e4] ss:$16 sps:$4 sm:$0xff]  }
  0xaf   : > { %1877 = vmatpush1.bf16.msra.mxu0 %v2743_v8  ;;  %2041 = vmatpush1.bf16.msra.mxu1 %v2746_v9  ;;  %v2826_v8 = vld [vmem:[%s3747_s1 + $0x6ec] ss:$16 sps:$4 sm:$0xff]   ;;  %v2821_v9 = vld [vmem:[%s3747_s1 + $0x6e0] ss:$16 sps:$4 sm:$0xff]  }
  0xb0   : > { %1878 = vmatprep.subr.bf16.mxu0 %v2751_v10  ;;  %2042 = vmatprep.subr.bf16.mxu1 %v2754_v11  ;;  %v2824_v10 = vld [vmem:[%s3747_s1 + $0x6e8] ss:$16 sps:$4 sm:$0xff]   ;;  %v2829_v11 = vld [vmem:[%s3747_s1 + $0x704] ss:$16 sps:$4 sm:$0xff]  }
  0xb3   : > { %1879 = vmatpush1.bf16.msra.mxu0 %v2749_v12  ;;  %2043 = vmatpush1.bf16.msra.mxu1 %v2752_v14  ;;  %v2832_v12 = vld [vmem:[%s3747_s1 + $0x70c] ss:$16 sps:$4 sm:$0xff]   ;;  %v2827_v14 = vld [vmem:[%s3747_s1 + $0x700] ss:$16 sps:$4 sm:$0xff]  }
  0xb4   : > { %1880 = vmatprep.subr.bf16.mxu0 %v2757_v15  ;;  %2044 = vmatprep.subr.bf16.mxu1 %v2760_v16  ;;  %v2830_v15 = vld [vmem:[%s3747_s1 + $0x708] ss:$16 sps:$4 sm:$0xff]   ;;  %v2835_v16 = vld [vmem:[%s3747_s1 + $0x724] ss:$16 sps:$4 sm:$0xff]  }
  0xb7   : > { %1881 = vmatpush1.bf16.msra.mxu0 %v2755_v17  ;;  %2045 = vmatpush1.bf16.msra.mxu1 %v2758_v18  ;;  %v2838_v17 = vld [vmem:[%s3747_s1 + $0x72c] ss:$16 sps:$4 sm:$0xff]   ;;  %v2833_v18 = vld [vmem:[%s3747_s1 + $0x720] ss:$16 sps:$4 sm:$0xff]  }
  0xb8   : > { %1882 = vmatprep.subr.bf16.mxu0 %v2763_v19  ;;  %2046 = vmatprep.subr.bf16.mxu1 %v2766_v20  ;;  %v2836_v19 = vld [vmem:[%s3747_s1 + $0x728] ss:$16 sps:$4 sm:$0xff]   ;;  %v2841_v20 = vld [vmem:[%s3747_s1 + $0x744] ss:$16 sps:$4 sm:$0xff]  }
  0xbb   : > { %1883 = vmatpush1.bf16.msra.mxu0 %v2761_v21  ;;  %2047 = vmatpush1.bf16.msra.mxu1 %v2764_v22  ;;  %v2844_v21 = vld [vmem:[%s3747_s1 + $0x74c] ss:$16 sps:$4 sm:$0xff]   ;;  %v2839_v22 = vld [vmem:[%s3747_s1 + $0x740] ss:$16 sps:$4 sm:$0xff]  }
  0xbc   : > { %1884 = vmatprep.subr.bf16.mxu0 %v2769_v23  ;;  %2048 = vmatprep.subr.bf16.mxu1 %v2772_v24  ;;  %v2842_v23 = vld [vmem:[%s3747_s1 + $0x748] ss:$16 sps:$4 sm:$0xff]   ;;  %v2847_v24 = vld [vmem:[%s3747_s1 + $0x764] ss:$16 sps:$4 sm:$0xff]  }
  0xbf   : > { %1885 = vmatpush1.bf16.msra.mxu0 %v2767_v26  ;;  %2049 = vmatpush1.bf16.msra.mxu1 %v2770_v27  ;;  %v2845_v26 = vld [vmem:[%s3747_s1 + $0x760] ss:$16 sps:$4 sm:$0xff]   ;;  %v2848_v27 = vld [vmem:[%s3747_s1 + $0x768] ss:$16 sps:$4 sm:$0xff]  }
  0xc0   : > { %1886 = vmatprep.subr.bf16.mxu0 %v2775_v28  ;;  %2050 = vmatprep.subr.bf16.mxu1 %v2778_v29  ;;  %v2853_v28 = vld [vmem:[%s3747_s1 + $0x784] ss:$16 sps:$4 sm:$0xff]   ;;  %v2856_v29 = vld [vmem:[%s3747_s1 + $0x78c] ss:$16 sps:$4 sm:$0xff]  }
  0xc3   : > { %1887 = vmatpush1.bf16.msra.mxu0 %v2773_v32  ;;  %2051 = vmatpush1.bf16.msra.mxu1 %v2776_v33  ;;  %v2859_v32 = vld [vmem:[%s3747_s1 + $0x7a4] ss:$16 sps:$4 sm:$0xff]   ;;  %v2862_v33 = vld [vmem:[%s3747_s1 + $0x7ac] ss:$16 sps:$4 sm:$0xff]  }
  0xc4   : > { %1897 = vmatprep.subr.bf16.mxu0 %v2781_v34  ;;  %2061 = vmatprep.subr.bf16.mxu1 %v2784_v49  ;;  %v2857_v34 = vld [vmem:[%s3747_s1 + $0x7a0] ss:$16 sps:$4 sm:$0xff]   ;;  %v2860_v49 = vld [vmem:[%s3747_s1 + $0x7a8] ss:$16 sps:$4 sm:$0xff]  }
  0xc6   : > { %1889 = vmatmul.mubr.bf16.vlgmr.msra.gmra.mrb[0].mxu0 %v212_v38  ;;  %2053 = vmatmul.mubr.bf16.vlgmr.msra.gmra.mrb[0].mxu1 %v212_v38  ;;  %v2868_v38 = vld [vmem:[%s3747_s1 + $0x7cc] ss:$16 sps:$4 sm:$0xff]  }
  0xc7   : > { %1898 = vmatpush1.bf16.msra.mxu0 %v2779_v39  ;;  %2062 = vmatpush1.bf16.msra.mxu1 %v2782_v41  ;;  %v194_v39 = vsub.s32 6, %v3037_v40  ;;  %v2863_v41 = vld [vmem:[%s3747_s1 + $0x7c0] ss:$16 sps:$4 sm:$0xff]  }
  0xc8   : > { %1899 = vmatprep.subr.bf16.mxu0 %v2787_v42  ;;  %2063 = vmatprep.subr.bf16.mxu1 %v2790_v43  ;;  %v2866_v42 = vld [vmem:[%s3747_s1 + $0x7c8] ss:$16 sps:$4 sm:$0xff]   ;;  %v2871_v43 = vld [vmem:[%s3747_s1 + $0x7e4] ss:$16 sps:$4 sm:$0xff]  }
  0xc9   : > { %1929 = vmatprep.mubr.bf16.mxu0 %v215_v44  ;;  %2093 = vmatprep.mubr.bf16.mxu1 %v215_v44  ;;  %v2874_v44 = vld [vmem:[%s3747_s1 + $0x7ec] ss:$16 sps:$4 sm:$0xff]  }
  0xcb   : > { %1900 = vmatpush1.bf16.msra.mxu0 %v2785_v45  ;;  %2064 = vmatpush1.bf16.msra.mxu1 %v2788_v47  ;;  %v195_v45 = vrot.slane %v3535_v35, %v194_v39  ;;  %v2869_v47 = vld [vmem:[%s3747_s1 + $0x7e0] ss:$16 sps:$4 sm:$0xff]  }
  0xcc   : > { %1901 = vmatprep.subr.bf16.mxu0 %v2793_v48  ;;  %2065 = vmatprep.subr.bf16.mxu1 %v2796_v50  ;;  %v2872_v48 = vld [vmem:[%s3747_s1 + $0x7e8] ss:$16 sps:$4 sm:$0xff]   ;;  %v472_v35 = vld [vmem:[%s3748_s2] sm:$0xf] }
  0xcd   : > { %v214_v50 = vpack.c.bf16 %v195_v45, %v195_v45 }
  0xcf   : > { %1902 = vmatpush1.bf16.msra.mxu0 %v2791_v51  ;;  %2066 = vmatpush1.bf16.msra.mxu1 %v2794_v52  ;;  %v2884_v51 = vmov 1966171168  }
  0xd0   : > { %1903 = vmatprep.subr.bf16.mxu0 %v2799_v53  ;;  %2067 = vmatprep.subr.bf16.mxu1 %v2802_v54  ;;  %v2109_v52 = vunpack.c.l.s4 %v2884_v51  ;;  %v1757_v53 = vrot.slane %v472_v35, %v170_v1  ;;  %v1765_v54 = vrot.slane %v472_v35, %v178_v13 }
  0xd3   : > { %1904 = vmatpush1.bf16.msra.mxu0 %v2797_v55  ;;  %2068 = vmatpush1.bf16.msra.mxu1 %v2800_v56  ;;  %v1761_v55 = vrot.slane %v472_v35, %v174_v46  ;;  %v2110_v56 = vunpack.c.0.s8 %v2109_v52 }
  0xd4   : > { %1905 = vmatprep.subr.bf16.mxu0 %v2805_v57  ;;  %2069 = vmatprep.subr.bf16.mxu1 %v2808_v58  ;;  %v1769_v57 = vrot.slane %v472_v35, %v182_v5 }
  0xd5   : > { %v2113_v1 = vsub.s32 %v2110_v56, %v3037_v40 }
  0xd7   : > { %1906 = vmatpush1.bf16.msra.mxu0 %v2803_v59  ;;  %2070 = vmatpush1.bf16.msra.mxu1 %v2806_v60 }
  0xd8   : > { %1907 = vmatprep.subr.bf16.mxu0 %v2811_v61  ;;  %2071 = vmatprep.subr.bf16.mxu1 %v2814_v62 }
  0xdb   : > { %1908 = vmatpush1.bf16.msra.mxu0 %v2809_v63  ;;  %2072 = vmatpush1.bf16.msra.mxu1 %v2812_v0 }
  0xdc   : > { %1909 = vmatprep.subr.bf16.mxu0 %v2817_v2  ;;  %2073 = vmatprep.subr.bf16.mxu1 %v2820_v3 }
  0xdf   : > { %1910 = vmatpush1.bf16.msra.mxu0 %v2815_v4  ;;  %2074 = vmatpush1.bf16.msra.mxu1 %v2818_v6 }
  0xe0   : > { %1911 = vmatprep.subr.bf16.mxu0 %v2823_v7  ;;  %2075 = vmatprep.subr.bf16.mxu1 %v2826_v8 }
  0xe3   : > { %1912 = vmatpush1.bf16.msra.mxu0 %v2821_v9  ;;  %2076 = vmatpush1.bf16.msra.mxu1 %v2824_v10 }
  0xe4   : > { %1913 = vmatprep.subr.bf16.mxu0 %v2829_v11  ;;  %2077 = vmatprep.subr.bf16.mxu1 %v2832_v12 }
  0xe7   : > { %1914 = vmatpush1.bf16.msra.mxu0 %v2827_v14  ;;  %2078 = vmatpush1.bf16.msra.mxu1 %v2830_v15 }
  0xe8   : > { %1915 = vmatprep.subr.bf16.mxu0 %v2835_v16  ;;  %2079 = vmatprep.subr.bf16.mxu1 %v2838_v17 }
  0xeb   : > { %1916 = vmatpush1.bf16.msra.mxu0 %v2833_v18  ;;  %2080 = vmatpush1.bf16.msra.mxu1 %v2836_v19 }
  0xec   : > { %1917 = vmatprep.subr.bf16.mxu0 %v2841_v20  ;;  %2081 = vmatprep.subr.bf16.mxu1 %v2844_v21 }
  0xef   : > { %1918 = vmatpush1.bf16.msra.mxu0 %v2839_v22  ;;  %2082 = vmatpush1.bf16.msra.mxu1 %v2842_v23 }
  0xf0   : > { %1919 = vmatprep.subr.bf16.mxu0 %v2847_v24  ;;  %2083 = vmatprep.subr.bf16.mxu1 %v2850_v25 }
  0xf3   : > { %1920 = vmatpush1.bf16.msra.mxu0 %v2845_v26  ;;  %2084 = vmatpush1.bf16.msra.mxu1 %v2848_v27 }
  0xf4   : > { %1921 = vmatprep.subr.bf16.mxu0 %v2853_v28  ;;  %2085 = vmatprep.subr.bf16.mxu1 %v2856_v29 }
  0xf7   : > { %1922 = vmatpush1.bf16.msra.mxu0 %v2851_v30  ;;  %2086 = vmatpush1.bf16.msra.mxu1 %v2854_v31 }
  0xf8   : > { %1923 = vmatprep.subr.bf16.mxu0 %v2859_v32  ;;  %2087 = vmatprep.subr.bf16.mxu1 %v2862_v33 }
  0xfb   : > { %1924 = vmatpush1.bf16.msra.mxu0 %v2857_v34  ;;  %2088 = vmatpush1.bf16.msra.mxu1 %v2860_v49 }
  0xfc   : > { %1925 = vmatprep.subr.bf16.mxu0 %v2865_v37  ;;  %2089 = vmatprep.subr.bf16.mxu1 %v2868_v38 }
  0xff   : > { %1926 = vmatpush1.bf16.msra.mxu0 %v2863_v41  ;;  %2090 = vmatpush1.bf16.msra.mxu1 %v2866_v42 }
 0x100   : > { %1927 = vmatprep.subr.bf16.mxu0 %v2871_v43  ;;  %2091 = vmatprep.subr.bf16.mxu1 %v2874_v44 }
 0x103   : > { %1928 = vmatpush1.bf16.msra.mxu0 %v2869_v47  ;;  %2092 = vmatpush1.bf16.msra.mxu1 %v2872_v48 }
 0x106   : > { %1930 = vmatmul.mubr.bf16.vlgmr.msra.gmra.mrb[0].mxu0 %v214_v50  ;;  %2094 = vmatmul.mubr.bf16.vlgmr.msra.gmra.mrb[0].mxu1 %v214_v50 }
 0x1d9   : > { %v1931_v58 = vpop.f32.mrb[0].mxu0  ;;  %v2095_v59 = vpop.f32.mrb[0].mxu1 }
 0x1da   : > { %v2454_v60 = vadd.f32 %v1931_v58, %v1757_v53  ;;  %v2456_v61 = vadd.f32 %v2095_v59, %v1765_v54  ;;  %v1933_v62 = vpop.f32.mrb[1].mxu0  ;;  %v2097_v63 = vpop.f32.mrb[1].mxu1 }
 0x1db   : > { %v2455_v0 = vadd.f32 %v1933_v62, %v1761_v55  ;;  %v2457_v2 = vadd.f32 %v2097_v63, %v1769_v57  ;;  %v1935_v3 = vpop.f32.mrb[2].mxu0  ;;  %v2099_v13 = vpop.f32.mrb[2].mxu1 }
 0x1dc   : > { %v1936_v4 = vpop.f32.mrb[3].mxu0  ;;  %v2100_v6 = vpop.f32.mrb[3].mxu1 }
 0x1dd   : > { %v2106_v46 = vcombine.low %v2454_v60, %v2455_v0  ;;  %v2107_v7 = vcombine.low %v2456_v61, %v2457_v2 }
 0x1df   : > { %v2114_v8 = vrot.slane %v2106_v46, %v2113_v1  ;;  %v2121_v5 = vrot.slane %v2107_v7, %v2113_v1 }
 0x1e1   : > { %v2122_v9 = vcombine.low %v2114_v8, %v2121_v5 }
 0x1e3   : > { %v2129_v10 = vrot.slane %v2122_v9, %v2113_v1 }
 0x1e5   : > { %2135 = vst.msk [vmem:[%s165_s22] sm:$0xf] %vm2133_vm0, %v2129_v10 }
 0x1e6 PF: > { %s13_s12 = sadd.s32 1, %s2882_s12  }
 0x1e7   : > { %p10_p4 = scmp.ge.s32.totalorder %s13_s12, 4  }
 0x1e9   :  { %12 = sbr.rel (!%p10_p4) target bundleno = 1 (0x1), region = 62 }

</bundles_post_ra>
